<compile_context>
chip_gen: v5e
topology: v5e:2x2
jax: 0.10.0
libtpu: 0.0.40
codegen_flags: <defaults>
</compile_context>

<pallas_src>
import functools
import math

import jax
import jax.numpy as jnp
from jax.experimental import pallas as pl
from jax.experimental.pallas import tpu as pltpu


def avgbert_kernel(lh_ref, img_ref, w1a_ref, w1b_ref, shift_ref, w2_ref, b2_ref,
                   out_ref, acc_ref, *, inv_s, pairwise_bf16):
    s = pl.program_id(1)

    @pl.when(s == 0)
    def _():
        acc_ref[...] = jnp.zeros_like(acc_ref)

    # Running sum over the sequence axis (torch.mean(last_hidden, dim=1) deferred to a
    # single epilogue multiply by 1/S).
    lh = lh_ref[...]
    if (pairwise_bf16 and lh.dtype == jnp.bfloat16
            and lh.shape[1] >= 2 and lh.shape[1] % 2 == 0):
        # One pairwise add in bf16 (bf16-native VALUs) halves per-element VPU work
        # before the f32 upcast — keeps the kernel HBM-bound at v7x bandwidth.
        half = lh.shape[1] // 2
        lh_pair = lh[:, :half, :] + lh[:, half:, :]
        acc_ref[...] += jnp.sum(lh_pair.astype(jnp.float32), axis=1)
    else:
        acc_ref[...] += jnp.sum(lh.astype(jnp.float32), axis=1)

    @pl.when(s == pl.num_programs(1) - 1)
    def _():
        mean_h = acc_ref[...] * inv_s                              # (TB, H) f32
        # ReLU applied to the (virtually) concatenated features:
        #   relu(concat(a, b)) @ W1 == relu(a) @ W1[:H] + relu(b) @ W1[H:]
        # Dots run in bf16 on the MXU with f32 accumulation.
        x1 = jnp.maximum(mean_h, 0.0).astype(w1a_ref.dtype)        # (TB, H)
        x2 = jnp.maximum(img_ref[...], 0).astype(w1b_ref.dtype)    # (TB, F)
        # linear1 with BatchNorm1d (eval) and b1 pre-folded into W1' / shift'.
        # TODO(synk): dropout layers are identity in eval mode; not emitted.
        h = (jnp.dot(x1, w1a_ref[...], preferred_element_type=jnp.float32)
             + jnp.dot(x2, w1b_ref[...], preferred_element_type=jnp.float32)
             + shift_ref[...])                                     # (TB, HID) f32
        # linear2 (output padded to a lane-dense multiple of 128).
        out_ref[...] = (jnp.dot(h.astype(w2_ref.dtype), w2_ref[...],
                                preferred_element_type=jnp.float32)
                        + b2_ref[...])                             # (TB, OUT_P)


def _round_up(x, m):
    return ((x + m - 1) // m) * m


def _pick_divisor_tile(total, target, granule):
    """Largest divisor of `total` that is <= target and a multiple of `granule`
    (or equal to the full extent, which is always layout-legal).  0 if none."""
    best = 0
    for d in range(1, total + 1):
        if total % d == 0 and d <= target and (d % granule == 0 or d == total):
            best = d
    return best


def _vmem_capacity_bytes():
    try:
        return int(pltpu.get_tpu_info().vmem_capacity_bytes)
    except Exception:
        pass
    try:
        kind = jax.devices()[0].device_kind.lower()
        if "v5" in kind or "v6" in kind:
            return 128 << 20
    except Exception:
        pass
    return 64 << 20     # conservative default (v7x per-TensorCore VMEM)


def average_bert_forward(last_hidden, pooled_output, feature_images, params):
    """Fused AverageBERTModel forward (eval-mode semantics).

    Pass `last_hidden` / `feature_images` in bf16 when possible: the kernel streams
    them at their stored width and accumulates in f32, so bf16 halves the dominant
    B*S*H HBM traffic.  The wrapper deliberately does NOT cast them.
    `pooled_output` is unused by the reference forward(); accepted for API parity.
    """
    del pooled_output
    B, S, H = last_hidden.shape
    F = feature_images.shape[1]
    HID = params["w1"].shape[1]          # 512
    OUT = params["w2"].shape[1]
    OUT_P = _round_up(OUT, 128)          # lane-dense output stores

    lh_item = jnp.dtype(last_hidden.dtype).itemsize
    img_item = jnp.dtype(feature_images.dtype).itemsize

    # ---- generation-aware VMEM budget -----------------------------------------
    vmem_cap = _vmem_capacity_bytes()
    if vmem_cap >= (100 << 20):          # v5e / v6e: 128 MiB physical VMEM
        vmem_clamp = 100 << 20
        per_buf_target = 24 << 20        # streamed last_hidden tile, per buffer
    else:                                # v7x: 64 MiB per TensorCore
        vmem_clamp = 52 << 20            # headroom for Mosaic internal scratch
        per_buf_target = 12 << 20
    small_vmem_chip = vmem_cap < (96 << 20)     # v7x-like

    # ---- batch tile: keep >= 2 batch blocks when B >= 16 so the "parallel" grid
    #      axis can shard across both v7x TensorCores (near-free on 1-core chips) --
    tb_target = 128 if B < 16 else min(128, max(8, B // 2))
    TB = _pick_divisor_tile(B, tb_target, 8)
    if TB == 0:
        TB = min(_round_up(B, 8), max(8, (tb_target // 8) * 8))
        B_pad = _round_up(B, TB)
    else:
        B_pad = B

    # ---- seq tile: as large as the VMEM budget allows (fewer, bigger DMAs) ------
    granule = 16 if last_hidden.dtype == jnp.bfloat16 else 8   # bf16: 16 rows/vreg
    weight_bytes = ((H * HID + F * HID + HID * OUT_P) * 2      # bf16 matrices
                    + (HID + OUT_P) * 4)                       # f32 shift / b2
    fixed_bytes = weight_bytes + TB * F * img_item + 2 * TB * OUT_P * 4 + TB * H * 4
    per_row = TB * H * lh_item
    stream_per_buf = max(per_row,
                         min(per_buf_target,
                             (int(0.8 * vmem_clamp) - fixed_bytes) // 2))
    ts_target = max(1, stream_per_buf // per_row)

    TS = _pick_divisor_tile(S, ts_target, granule)
    if TS == 0 and granule != 8:
        TS = _pick_divisor_tile(S, ts_target, 8)   # multiple-of-8 is still legal
    if TS == 0:
        # No legal divisor fits the VMEM budget (e.g. prime/odd S): zero-pad the
        # seq axis — exact for a sum; the mean divides by the true S below.
        TS = max(granule, (min(ts_target, S) // granule) * granule)
        S_pad = _round_up(S, TS)
    else:
        S_pad = S

    if B_pad != B or S_pad != S:
        last_hidden = jnp.pad(last_hidden, ((0, B_pad - B), (0, S_pad - S), (0, 0)))
    if B_pad != B:
        feature_images = jnp.pad(feature_images, ((0, B_pad - B), (0, 0)))

    # ---- fold BatchNorm1d (eval) + b1 into W1' / shift'; store matrices in bf16 --
    eps = 1e-5
    f32 = jnp.float32
    gamma = params["bn_gamma"].astype(f32)
    beta = params["bn_beta"].astype(f32)
    rmean = params["bn_running_mean"].astype(f32)
    rvar = params["bn_running_var"].astype(f32)
    scale = gamma / jnp.sqrt(rvar + eps)                                  # (HID,)
    shift = ((params["b1"].astype(f32) - rmean) * scale + beta).reshape(1, HID)

    w1 = params["w1"].astype(f32) * scale[None, :]                        # (H+F, HID)
    w1a = w1[:H, :].astype(jnp.bfloat16)                                  # (H, HID)
    w1b = w1[H:, :].astype(jnp.bfloat16)                                  # (F, HID)
    w2 = jnp.pad(params["w2"].astype(f32),
                 ((0, 0), (0, OUT_P - OUT))).astype(jnp.bfloat16)         # (HID, OUT_P)
    b2 = jnp.pad(params["b2"].astype(f32), (0, OUT_P - OUT)).reshape(1, OUT_P)

    # ---- cost hint for XLA scheduling around a memory-bound custom call ---------
    flops = 2 * B_pad * (H + F) * HID + 2 * B_pad * HID * OUT_P + B_pad * S_pad * H
    bytes_accessed = (B_pad * S_pad * H * lh_item + B_pad * F * img_item
                      + weight_bytes + B_pad * OUT_P * 4)
    cost = pl.CostEstimate(flops=flops, transcendentals=0,
                           bytes_accessed=bytes_accessed)

    grid = (B_pad // TB, S_pad // TS)
    kernel = functools.partial(
        avgbert_kernel, inv_s=float(1.0 / S),
        pairwise_bf16=bool(small_vmem_chip and last_hidden.dtype == jnp.bfloat16))

    def _run(single_buffer_resident):
        # Resident operands (constant block index along the seq axis) don't need
        # double-buffering; single-buffering them reclaims VMEM for a bigger TS.
        res_kw = {"pipeline_mode": pl.Buffered(1)} if single_buffer_resident else {}
        res_mult = 1 if single_buffer_resident else 2
        vmem_bytes = (2 * TB * TS * H * lh_item                 # streamed last_hidden
                      + res_mult * (TB * F * img_item + weight_bytes)
                      + 2 * TB * OUT_P * 4                      # output tile
                      + TB * H * 4)                             # accumulator scratch
        vmem_limit = int(min(vmem_clamp,
                             max(int(vmem_bytes * 1.3) + (4 << 20), 16 << 20)))
        out = pl.pallas_call(
            kernel,
            out_shape=jax.ShapeDtypeStruct((B_pad, OUT_P), jnp.float32),
            grid=grid,
            in_specs=[
                pl.BlockSpec((TB, TS, H), lambda b, s: (b, s, 0)),        # streamed
                pl.BlockSpec((TB, F), lambda b, s: (b, 0), **res_kw),     # features
                pl.BlockSpec((H, HID), lambda b, s: (0, 0), **res_kw),    # w1a'
                pl.BlockSpec((F, HID), lambda b, s: (0, 0), **res_kw),    # w1b'
                pl.BlockSpec((1, HID), lambda b, s: (0, 0), **res_kw),    # fused shift
                pl.BlockSpec((HID, OUT_P), lambda b, s: (0, 0), **res_kw),# w2 (padded)
                pl.BlockSpec((1, OUT_P), lambda b, s: (0, 0), **res_kw),  # b2 (padded)
            ],
            out_specs=pl.BlockSpec((TB, OUT_P), lambda b, s: (b, 0)),
            scratch_shapes=[pltpu.VMEM((TB, H), jnp.float32)],
            compiler_params=pltpu.CompilerParams(
                dimension_semantics=("parallel", "arbitrary"),
                vmem_limit_bytes=vmem_limit),
            cost_estimate=cost,
        )(last_hidden, feature_images, w1a, w1b, shift, w2, b2)
        return jax.block_until_ready(out)

    try:
        out_padded = _run(True)
    except Exception:
        # pl.Buffered(1) not accepted on this jax/Mosaic version -> default pipelining.
        out_padded = _run(False)

    return out_padded[:B, :OUT]


def init_params(key, bert_hidden_size, image_feature_size, output_dim, mlp_hidden=512):
    in1 = bert_hidden_size + image_feature_size
    k1, k2, k3, k4, k5, k6 = jax.random.split(key, 6)
    # PyTorch nn.Linear default init: U(-1/sqrt(fan_in), 1/sqrt(fan_in))
    bnd1 = 1.0 / math.sqrt(in1)
    bnd2 = 1.0 / math.sqrt(mlp_hidden)
    return {
        "w1": jax.random.uniform(k1, (in1, mlp_hidden), jnp.float32, -bnd1, bnd1),
        "b1": jax.random.uniform(k2, (mlp_hidden,), jnp.float32, -bnd1, bnd1),
        "w2": jax.random.uniform(k3, (mlp_hidden, output_dim), jnp.float32, -bnd2, bnd2),
        "b2": jax.random.uniform(k4, (output_dim,), jnp.float32, -bnd2, bnd2),
        # BatchNorm1d(512): gamma=1, beta=0, running stats (0, 1) at init;
        # perturb deterministically so the affine path is nontrivial.
        "bn_gamma": 1.0 + 0.1 * jax.random.normal(k5, (mlp_hidden,), jnp.float32),
        "bn_beta": 0.1 * jax.random.normal(k6, (mlp_hidden,), jnp.float32),
        "bn_running_mean": 0.05 * jax.random.normal(k5, (mlp_hidden,), jnp.float32),
        "bn_running_var": 1.0 + 0.1 * jax.random.uniform(k6, (mlp_hidden,), jnp.float32),
    }


def reference_forward(last_hidden, pooled_output, feature_images, params):
    """Pure-JAX reference with identical (eval-mode) semantics."""
    del pooled_output
    mean_hidden = jnp.mean(last_hidden.astype(jnp.float32), axis=1)
    x = jnp.concatenate([mean_hidden, feature_images.astype(jnp.float32)], axis=1)
    x = jnp.maximum(x, 0.0)
    h = x @ params["w1"] + params["b1"]
    eps = 1e-5
    h = ((h - params["bn_running_mean"]) / jnp.sqrt(params["bn_running_var"] + eps)
         * params["bn_gamma"] + params["bn_beta"])
    return h @ params["w2"] + params["b2"]


if __name__ == "__main__":
    # Small, forward-consistent shapes.
    B, S = 8, 8
    bert_hidden_size = 32
    image_feature_size = 32
    output_dim = 8

    key = jax.random.PRNGKey(0)
    kx, kp, kf, kparam = jax.random.split(key, 4)
    # bf16 activations per the wrapper contract (halves the dominant HBM stream).
    last_hidden = jax.random.normal(
        kx, (B, S, bert_hidden_size), jnp.float32).astype(jnp.bfloat16)
    pooled_output = jax.random.normal(kp, (B, bert_hidden_size), jnp.float32)  # unused
    feature_images = jax.random.normal(
        kf, (B, image_feature_size), jnp.float32).astype(jnp.bfloat16)
    params = init_params(kparam, bert_hidden_size, image_feature_size, output_dim)

    out = average_bert_forward(last_hidden, pooled_output, feature_images, params)
    out = jax.block_until_ready(out)

    ref = reference_forward(last_hidden, pooled_output, feature_images, params)
    assert out.shape == (B, output_dim)
    # bf16 weights/activations on the MXU -> looser-than-f32 tolerance.
    assert jnp.allclose(out, ref, atol=3e-2, rtol=3e-2), "mismatch vs JAX reference"

    print("KERNEL_OK")
</pallas_src>

<mosaic_0001>
module attributes {stable_mosaic.version = 11 : i64} {
  func.func @avgbert_kernel(%arg0: i32, %arg1: i32, %arg2: memref<8x8x32xbf16, #tpu.memory_space<vmem>>, %arg3: memref<8x32xbf16, #tpu.memory_space<vmem>>, %arg4: memref<32x512xbf16, #tpu.memory_space<vmem>>, %arg5: memref<32x512xbf16, #tpu.memory_space<vmem>>, %arg6: memref<1x512xf32, #tpu.memory_space<vmem>>, %arg7: memref<512x128xbf16, #tpu.memory_space<vmem>>, %arg8: memref<1x128xf32, #tpu.memory_space<vmem>>, %arg9: memref<8x128xf32, #tpu.memory_space<vmem>>, %arg10: memref<8x32xf32, #tpu.memory_space<vmem>>) attributes {dimension_semantics = [#tpu.dimension_semantics<parallel>, #tpu.dimension_semantics<arbitrary>], iteration_bounds = array<i64: 1, 1>, scalar_prefetch = 0 : i64, scratch_operands = 1 : i64, tpu.core_type = #tpu.core_type<tc>, window_params = [{transform_indices = @transform_0, window_bounds = array<i64: 8, 8, 32>}, {pipeline_mode = #tpu.pipeline_mode<synchronous>, transform_indices = @transform_1, window_bounds = array<i64: 8, 32>}, {pipeline_mode = #tpu.pipeline_mode<synchronous>, transform_indices = @transform_2, window_bounds = array<i64: 32, 512>}, {pipeline_mode = #tpu.pipeline_mode<synchronous>, transform_indices = @transform_3, window_bounds = array<i64: 32, 512>}, {pipeline_mode = #tpu.pipeline_mode<synchronous>, transform_indices = @transform_4, window_bounds = array<i64: 1, 512>}, {pipeline_mode = #tpu.pipeline_mode<synchronous>, transform_indices = @transform_5, window_bounds = array<i64: 512, 128>}, {pipeline_mode = #tpu.pipeline_mode<synchronous>, transform_indices = @transform_6, window_bounds = array<i64: 1, 128>}, {transform_indices = @transform_7, window_bounds = array<i64: 8, 128>}]} {
    %c0_i32 = arith.constant 0 : i32
    %0 = arith.cmpi eq, %arg1, %c0_i32 : i32
    %1 = arith.extui %0 : i1 to i32
    %c0_i32_0 = arith.constant 0 : i32
    %2 = arith.cmpi ne, %1, %c0_i32_0 : i32
    scf.if %2 {
      %cst_9 = arith.constant 0.000000e+00 : f32
      %15 = vector.broadcast %cst_9 : f32 to vector<8x32xf32>
      %c0_10 = arith.constant 0 : index
      %c0_11 = arith.constant 0 : index
      %16 = vector.load %arg10[%c0_10, %c0_11] : memref<8x32xf32, #tpu.memory_space<vmem>>, vector<8x32xf32>
      tpu.vector_store %arg10[%c0_10, %c0_11], %15 {strides = array<i32>} : memref<8x32xf32, #tpu.memory_space<vmem>>, vector<8x32xf32>,
    } else {
    }
    %c0 = arith.constant 0 : index
    %c0_1 = arith.constant 0 : index
    %c0_2 = arith.constant 0 : index
    %3 = vector.load %arg2[%c0, %c0_1, %c0_2] : memref<8x8x32xbf16, #tpu.memory_space<vmem>>, vector<8x8x32xbf16>
    %4 = vector.extract_strided_slice %3 {offsets = [0, 0, 0], sizes = [8, 4, 32], strides = [1, 1, 1]} : vector<8x8x32xbf16> to vector<8x4x32xbf16>
    %5 = vector.extract_strided_slice %3 {offsets = [0, 4, 0], sizes = [8, 4, 32], strides = [1, 1, 1]} : vector<8x8x32xbf16> to vector<8x4x32xbf16>
    %6 = arith.addf %4, %5 : vector<8x4x32xbf16>
    %c0_3 = arith.constant 0 : index
    %c0_4 = arith.constant 0 : index
    %7 = vector.load %arg10[%c0_3, %c0_4] : memref<8x32xf32, #tpu.memory_space<vmem>>, vector<8x32xf32>
    %8 = arith.extf %6 : vector<8x4x32xbf16> to vector<8x4x32xf32>
    %cst = arith.constant dense<0.000000e+00> : vector<8x32xf32>
    %9 = vector.multi_reduction <add>, %8, %cst [1] : vector<8x4x32xf32> to vector<8x32xf32>
    %10 = arith.addf %7, %9 : vector<8x32xf32>
    %c0_5 = arith.constant 0 : index
    %c0_6 = arith.constant 0 : index
    %11 = vector.load %arg10[%c0_5, %c0_6] : memref<8x32xf32, #tpu.memory_space<vmem>>, vector<8x32xf32>
    tpu.vector_store %arg10[%c0_5, %c0_6], %10 {strides = array<i32>} : memref<8x32xf32, #tpu.memory_space<vmem>>, vector<8x32xf32>,
    %c0_i32_7 = arith.constant 0 : i32
    %12 = arith.cmpi eq, %arg1, %c0_i32_7 : i32
    %13 = arith.extui %12 : i1 to i32
    %c0_i32_8 = arith.constant 0 : i32
    %14 = arith.cmpi ne, %13, %c0_i32_8 : i32
    scf.if %14 {
      %c0_9 = arith.constant 0 : index
      %c0_10 = arith.constant 0 : index
      %15 = vector.load %arg10[%c0_9, %c0_10] : memref<8x32xf32, #tpu.memory_space<vmem>>, vector<8x32xf32>
      %cst_11 = arith.constant 1.250000e-01 : f32
      %16 = vector.broadcast %cst_11 : f32 to vector<8x32xf32>
      %17 = arith.mulf %15, %16 : vector<8x32xf32>
      %cst_12 = arith.constant 0.000000e+00 : f32
      %18 = vector.broadcast %cst_12 : f32 to vector<8x32xf32>
      %19 = arith.maximumf %17, %18 : vector<8x32xf32>
      %20 = arith.truncf %19 : vector<8x32xf32> to vector<8x32xbf16>
      %c0_13 = arith.constant 0 : index
      %c0_14 = arith.constant 0 : index
      %21 = vector.load %arg3[%c0_13, %c0_14] : memref<8x32xbf16, #tpu.memory_space<vmem>>, vector<8x32xbf16>
      %cst_15 = arith.constant 0.000000e+00 : bf16
      %22 = vector.broadcast %cst_15 : bf16 to vector<8x32xbf16>
      %23 = arith.maximumf %21, %22 : vector<8x32xbf16>
      %c0_16 = arith.constant 0 : index
      %c0_17 = arith.constant 0 : index
      %24 = vector.load %arg4[%c0_16, %c0_17] : memref<32x512xbf16, #tpu.memory_space<vmem>>, vector<32x512xbf16>
      %cst_18 = arith.constant dense<0.000000e+00> : vector<8x512xf32>
      %25 = tpu.matmul %20, %24, %cst_18 {dimension_numbers = #tpu.dot_dimension_numbers<[1], [0], [0], [1], [0, 0, 1, 1], [], []>} : vector<8x32xbf16>, vector<32x512xbf16>, vector<8x512xf32> -> vector<8x512xf32>
      %c0_19 = arith.constant 0 : index
      %c0_20 = arith.constant 0 : index
      %26 = vector.load %arg5[%c0_19, %c0_20] : memref<32x512xbf16, #tpu.memory_space<vmem>>, vector<32x512xbf16>
      %cst_21 = arith.constant dense<0.000000e+00> : vector<8x512xf32>
      %27 = tpu.matmul %23, %26, %cst_21 {dimension_numbers = #tpu.dot_dimension_numbers<[1], [0], [0], [1], [0, 0, 1, 1], [], []>} : vector<8x32xbf16>, vector<32x512xbf16>, vector<8x512xf32> -> vector<8x512xf32>
      %28 = arith.addf %25, %27 : vector<8x512xf32>
      %c0_22 = arith.constant 0 : index
      %c0_23 = arith.constant 0 : index
      %29 = vector.load %arg6[%c0_22, %c0_23] : memref<1x512xf32, #tpu.memory_space<vmem>>, vector<1x512xf32>
      %30 = vector.broadcast %29 : vector<1x512xf32> to vector<8x512xf32>
      %31 = arith.addf %28, %30 : vector<8x512xf32>
      %32 = arith.truncf %31 : vector<8x512xf32> to vector<8x512xbf16>
      %c0_24 = arith.constant 0 : index
      %c0_25 = arith.constant 0 : index
      %33 = vector.load %arg7[%c0_24, %c0_25] : memref<512x128xbf16, #tpu.memory_space<vmem>>, vector<512x128xbf16>
      %cst_26 = arith.constant dense<0.000000e+00> : vector<8x128xf32>
      %34 = tpu.matmul %32, %33, %cst_26 {dimension_numbers = #tpu.dot_dimension_numbers<[1], [0], [0], [1], [0, 0, 1, 1], [], []>} : vector<8x512xbf16>, vector<512x128xbf16>, vector<8x128xf32> -> vector<8x128xf32>
      %c0_27 = arith.constant 0 : index
      %c0_28 = arith.constant 0 : index
      %35 = vector.load %arg8[%c0_27, %c0_28] : memref<1x128xf32, #tpu.memory_space<vmem>>, vector<1x128xf32>
      %36 = vector.broadcast %35 : vector<1x128xf32> to vector<8x128xf32>
      %37 = arith.addf %34, %36 : vector<8x128xf32>
      %c0_29 = arith.constant 0 : index
      %c0_30 = arith.constant 0 : index
      %38 = vector.load %arg9[%c0_29, %c0_30] : memref<8x128xf32, #tpu.memory_space<vmem>>, vector<8x128xf32>
      tpu.vector_store %arg9[%c0_29, %c0_30], %37 {strides = array<i32>} : memref<8x128xf32, #tpu.memory_space<vmem>>, vector<8x128xf32>,
    } else {
    }
    return
  }
  func.func @transform_0(%arg0: i32, %arg1: i32) -> (i32, i32, i32) {
    %c0_i32 = arith.constant 0 : i32
    %c0_i32_0 = arith.constant 0 : i32
    return %arg0, %arg1, %c0_i32 : i32, i32, i32
  }
  func.func @transform_1(%arg0: i32, %arg1: i32) -> (i32, i32) {
    %c0_i32 = arith.constant 0 : i32
    %c0_i32_0 = arith.constant 0 : i32
    return %arg0, %c0_i32 : i32, i32
  }
  func.func @transform_2(%arg0: i32, %arg1: i32) -> (i32, i32) {
    %c0_i32 = arith.constant 0 : i32
    %c0_i32_0 = arith.constant 0 : i32
    %c0_i32_1 = arith.constant 0 : i32
    return %c0_i32, %c0_i32_0 : i32, i32
  }
  func.func @transform_3(%arg0: i32, %arg1: i32) -> (i32, i32) {
    %c0_i32 = arith.constant 0 : i32
    %c0_i32_0 = arith.constant 0 : i32
    %c0_i32_1 = arith.constant 0 : i32
    return %c0_i32, %c0_i32_0 : i32, i32
  }
  func.func @transform_4(%arg0: i32, %arg1: i32) -> (i32, i32) {
    %c0_i32 = arith.constant 0 : i32
    %c0_i32_0 = arith.constant 0 : i32
    %c0_i32_1 = arith.constant 0 : i32
    return %c0_i32, %c0_i32_0 : i32, i32
  }
  func.func @transform_5(%arg0: i32, %arg1: i32) -> (i32, i32) {
    %c0_i32 = arith.constant 0 : i32
    %c0_i32_0 = arith.constant 0 : i32
    %c0_i32_1 = arith.constant 0 : i32
    return %c0_i32, %c0_i32_0 : i32, i32
  }
  func.func @transform_6(%arg0: i32, %arg1: i32) -> (i32, i32) {
    %c0_i32 = arith.constant 0 : i32
    %c0_i32_0 = arith.constant 0 : i32
    %c0_i32_1 = arith.constant 0 : i32
    return %c0_i32, %c0_i32_0 : i32, i32
  }
  func.func @transform_7(%arg0: i32, %arg1: i32) -> (i32, i32) {
    %c0_i32 = arith.constant 0 : i32
    %c0_i32_0 = arith.constant 0 : i32
    return %arg0, %c0_i32 : i32, i32
  }
}

module attributes {stable_mosaic.version = 11 : i64} {
  func.func @avgbert_kernel(%arg0: i32, %arg1: i32, %arg2: memref<8x8x32xbf16, #tpu.memory_space<vmem>>, %arg3: memref<8x32xbf16, #tpu.memory_space<vmem>>, %arg4: memref<32x512xbf16, #tpu.memory_space<vmem>>, %arg5: memref<32x512xbf16, #tpu.memory_space<vmem>>, %arg6: memref<1x512xf32, #tpu.memory_space<vmem>>, %arg7: memref<512x128xbf16, #tpu.memory_space<vmem>>, %arg8: memref<1x128xf32, #tpu.memory_space<vmem>>, %arg9: memref<8x128xf32, #tpu.memory_space<vmem>>, %arg10: memref<8x32xf32, #tpu.memory_space<vmem>>) attributes {dimension_semantics = [#tpu.dimension_semantics<parallel>, #tpu.dimension_semantics<arbitrary>], iteration_bounds = array<i64: 1, 1>, scalar_prefetch = 0 : i64, scratch_operands = 1 : i64, tpu.core_type = #tpu.core_type<tc>, window_params = [{transform_indices = @transform_0, window_bounds = array<i64: 8, 8, 32>}, {transform_indices = @transform_1, window_bounds = array<i64: 8, 32>}, {pipeline_mode = #tpu.pipeline_mode<synchronous>, transform_indices = @transform_2, window_bounds = array<i64: 32, 512>}, {pipeline_mode = #tpu.pipeline_mode<synchronous>, transform_indices = @transform_3, window_bounds = array<i64: 32, 512>}, {pipeline_mode = #tpu.pipeline_mode<synchronous>, transform_indices = @transform_4, window_bounds = array<i64: 1, 512>}, {pipeline_mode = #tpu.pipeline_mode<synchronous>, transform_indices = @transform_5, window_bounds = array<i64: 512, 128>}, {pipeline_mode = #tpu.pipeline_mode<synchronous>, transform_indices = @transform_6, window_bounds = array<i64: 1, 128>}, {transform_indices = @transform_7, window_bounds = array<i64: 8, 128>}]} {
    %c0_i32 = arith.constant 0 : i32
    %0 = arith.cmpi eq, %arg1, %c0_i32 : i32
    %1 = arith.extui %0 : i1 to i32
    %c0_i32_0 = arith.constant 0 : i32
    %2 = arith.cmpi ne, %1, %c0_i32_0 : i32
    scf.if %2 {
      %cst_9 = arith.constant 0.000000e+00 : f32
      %15 = vector.broadcast %cst_9 : f32 to vector<8x32xf32>
      %c0_10 = arith.constant 0 : index
      %c0_11 = arith.constant 0 : index
      %16 = vector.load %arg10[%c0_10, %c0_11] : memref<8x32xf32, #tpu.memory_space<vmem>>, vector<8x32xf32>
      tpu.vector_store %arg10[%c0_10, %c0_11], %15 {strides = array<i32>} : memref<8x32xf32, #tpu.memory_space<vmem>>, vector<8x32xf32>,
    } else {
    }
    %c0 = arith.constant 0 : index
    %c0_1 = arith.constant 0 : index
    %c0_2 = arith.constant 0 : index
    %3 = vector.load %arg2[%c0, %c0_1, %c0_2] : memref<8x8x32xbf16, #tpu.memory_space<vmem>>, vector<8x8x32xbf16>
    %4 = vector.extract_strided_slice %3 {offsets = [0, 0, 0], sizes = [8, 4, 32], strides = [1, 1, 1]} : vector<8x8x32xbf16> to vector<8x4x32xbf16>
    %5 = vector.extract_strided_slice %3 {offsets = [0, 4, 0], sizes = [8, 4, 32], strides = [1, 1, 1]} : vector<8x8x32xbf16> to vector<8x4x32xbf16>
    %6 = arith.addf %4, %5 : vector<8x4x32xbf16>
    %c0_3 = arith.constant 0 : index
    %c0_4 = arith.constant 0 : index
    %7 = vector.load %arg10[%c0_3, %c0_4] : memref<8x32xf32, #tpu.memory_space<vmem>>, vector<8x32xf32>
    %8 = arith.extf %6 : vector<8x4x32xbf16> to vector<8x4x32xf32>
    %cst = arith.constant dense<0.000000e+00> : vector<8x32xf32>
    %9 = vector.multi_reduction <add>, %8, %cst [1] : vector<8x4x32xf32> to vector<8x32xf32>
    %10 = arith.addf %7, %9 : vector<8x32xf32>
    %c0_5 = arith.constant 0 : index
    %c0_6 = arith.constant 0 : index
    %11 = vector.load %arg10[%c0_5, %c0_6] : memref<8x32xf32, #tpu.memory_space<vmem>>, vector<8x32xf32>
    tpu.vector_store %arg10[%c0_5, %c0_6], %10 {strides = array<i32>} : memref<8x32xf32, #tpu.memory_space<vmem>>, vector<8x32xf32>,
    %c0_i32_7 = arith.constant 0 : i32
    %12 = arith.cmpi eq, %arg1, %c0_i32_7 : i32
    %13 = arith.extui %12 : i1 to i32
    %c0_i32_8 = arith.constant 0 : i32
    %14 = arith.cmpi ne, %13, %c0_i32_8 : i32
    scf.if %14 {
      %c0_9 = arith.constant 0 : index
      %c0_10 = arith.constant 0 : index
      %15 = vector.load %arg10[%c0_9, %c0_10] : memref<8x32xf32, #tpu.memory_space<vmem>>, vector<8x32xf32>
      %cst_11 = arith.constant 1.250000e-01 : f32
      %16 = vector.broadcast %cst_11 : f32 to vector<8x32xf32>
      %17 = arith.mulf %15, %16 : vector<8x32xf32>
      %cst_12 = arith.constant 0.000000e+00 : f32
      %18 = vector.broadcast %cst_12 : f32 to vector<8x32xf32>
      %19 = arith.maximumf %17, %18 : vector<8x32xf32>
      %20 = arith.truncf %19 : vector<8x32xf32> to vector<8x32xbf16>
      %c0_13 = arith.constant 0 : index
      %c0_14 = arith.constant 0 : index
      %21 = vector.load %arg3[%c0_13, %c0_14] : memref<8x32xbf16, #tpu.memory_space<vmem>>, vector<8x32xbf16>
      %cst_15 = arith.constant 0.000000e+00 : bf16
      %22 = vector.broadcast %cst_15 : bf16 to vector<8x32xbf16>
      %23 = arith.maximumf %21, %22 : vector<8x32xbf16>
      %c0_16 = arith.constant 0 : index
      %c0_17 = arith.constant 0 : index
      %24 = vector.load %arg4[%c0_16, %c0_17] : memref<32x512xbf16, #tpu.memory_space<vmem>>, vector<32x512xbf16>
      %cst_18 = arith.constant dense<0.000000e+00> : vector<8x512xf32>
      %25 = tpu.matmul %20, %24, %cst_18 {dimension_numbers = #tpu.dot_dimension_numbers<[1], [0], [0], [1], [0, 0, 1, 1], [], []>} : vector<8x32xbf16>, vector<32x512xbf16>, vector<8x512xf32> -> vector<8x512xf32>
      %c0_19 = arith.constant 0 : index
      %c0_20 = arith.constant 0 : index
      %26 = vector.load %arg5[%c0_19, %c0_20] : memref<32x512xbf16, #tpu.memory_space<vmem>>, vector<32x512xbf16>
      %cst_21 = arith.constant dense<0.000000e+00> : vector<8x512xf32>
      %27 = tpu.matmul %23, %26, %cst_21 {dimension_numbers = #tpu.dot_dimension_numbers<[1], [0], [0], [1], [0, 0, 1, 1], [], []>} : vector<8x32xbf16>, vector<32x512xbf16>, vector<8x512xf32> -> vector<8x512xf32>
      %28 = arith.addf %25, %27 : vector<8x512xf32>
      %c0_22 = arith.constant 0 : index
      %c0_23 = arith.constant 0 : index
      %29 = vector.load %arg6[%c0_22, %c0_23] : memref<1x512xf32, #tpu.memory_space<vmem>>, vector<1x512xf32>
      %30 = vector.broadcast %29 : vector<1x512xf32> to vector<8x512xf32>
      %31 = arith.addf %28, %30 : vector<8x512xf32>
      %32 = arith.truncf %31 : vector<8x512xf32> to vector<8x512xbf16>
      %c0_24 = arith.constant 0 : index
      %c0_25 = arith.constant 0 : index
      %33 = vector.load %arg7[%c0_24, %c0_25] : memref<512x128xbf16, #tpu.memory_space<vmem>>, vector<512x128xbf16>
      %cst_26 = arith.constant dense<0.000000e+00> : vector<8x128xf32>
      %34 = tpu.matmul %32, %33, %cst_26 {dimension_numbers = #tpu.dot_dimension_numbers<[1], [0], [0], [1], [0, 0, 1, 1], [], []>} : vector<8x512xbf16>, vector<512x128xbf16>, vector<8x128xf32> -> vector<8x128xf32>
      %c0_27 = arith.constant 0 : index
      %c0_28 = arith.constant 0 : index
      %35 = vector.load %arg8[%c0_27, %c0_28] : memref<1x128xf32, #tpu.memory_space<vmem>>, vector<1x128xf32>
      %36 = vector.broadcast %35 : vector<1x128xf32> to vector<8x128xf32>
      %37 = arith.addf %34, %36 : vector<8x128xf32>
      %c0_29 = arith.constant 0 : index
      %c0_30 = arith.constant 0 : index
      %38 = vector.load %arg9[%c0_29, %c0_30] : memref<8x128xf32, #tpu.memory_space<vmem>>, vector<8x128xf32>
      tpu.vector_store %arg9[%c0_29, %c0_30], %37 {strides = array<i32>} : memref<8x128xf32, #tpu.memory_space<vmem>>, vector<8x128xf32>,
    } else {
    }
    return
  }
  func.func @transform_0(%arg0: i32, %arg1: i32) -> (i32, i32, i32) {
    %c0_i32 = arith.constant 0 : i32
    %c0_i32_0 = arith.constant 0 : i32
    return %arg0, %arg1, %c0_i32 : i32, i32, i32
  }
  func.func @transform_1(%arg0: i32, %arg1: i32) -> (i32, i32) {
    %c0_i32 = arith.constant 0 : i32
    %c0_i32_0 = arith.constant 0 : i32
    return %arg0, %c0_i32 : i32, i32
  }
  func.func @transform_2(%arg0: i32, %arg1: i32) -> (i32, i32) {
    %c0_i32 = arith.constant 0 : i32
    %c0_i32_0 = arith.constant 0 : i32
    %c0_i32_1 = arith.constant 0 : i32
    return %c0_i32, %c0_i32_0 : i32, i32
  }
  func.func @transform_3(%arg0: i32, %arg1: i32) -> (i32, i32) {
    %c0_i32 = arith.constant 0 : i32
    %c0_i32_0 = arith.constant 0 : i32
    %c0_i32_1 = arith.constant 0 : i32
    return %c0_i32, %c0_i32_0 : i32, i32
  }
  func.func @transform_4(%arg0: i32, %arg1: i32) -> (i32, i32) {
    %c0_i32 = arith.constant 0 : i32
    %c0_i32_0 = arith.constant 0 : i32
    %c0_i32_1 = arith.constant 0 : i32
    return %c0_i32, %c0_i32_0 : i32, i32
  }
  func.func @transform_5(%arg0: i32, %arg1: i32) -> (i32, i32) {
    %c0_i32 = arith.constant 0 : i32
    %c0_i32_0 = arith.constant 0 : i32
    %c0_i32_1 = arith.constant 0 : i32
    return %c0_i32, %c0_i32_0 : i32, i32
  }
  func.func @transform_6(%arg0: i32, %arg1: i32) -> (i32, i32) {
    %c0_i32 = arith.constant 0 : i32
    %c0_i32_0 = arith.constant 0 : i32
    %c0_i32_1 = arith.constant 0 : i32
    return %c0_i32, %c0_i32_0 : i32, i32
  }
  func.func @transform_7(%arg0: i32, %arg1: i32) -> (i32, i32) {
    %c0_i32 = arith.constant 0 : i32
    %c0_i32_0 = arith.constant 0 : i32
    return %arg0, %c0_i32 : i32, i32
  }
}

</mosaic_0001>

<bundles_post_ra>
// kernel: tpu_custom_call.1
= control target key start
LH: loop header
LB: loop body
LE: loop exit
PB: predicated region body
PF: predicated region fallthrough
CT: control target
= control target key end

     0   :  { %12 = vsyncpa [#allocation4], 0  ;;  %s1393_s0 = inlined_call_operand.hbm [shape: bf16[8,8,32], index: 0, kind: input, shape index: {}]   ;;  %s1394_s1 = inlined_call_operand.hbm [shape: bf16[8,32], index: 1, kind: input, shape index: {}]   ;;  %s1395_s2 = inlined_call_operand.hbm [shape: bf16[32,512], index: 2, kind: input, shape index: {}]   ;;  %s1396_s3 = inlined_call_operand.hbm [shape: bf16[32,512], index: 3, kind: input, shape index: {}]   ;;  %s1397_s4 = inlined_call_operand.hbm [shape: f32[1,512], index: 4, kind: input, shape index: {}]   ;;  %s1398_s5 = inlined_call_operand.hbm [shape: bf16[512,128], index: 5, kind: input, shape index: {}]   ;;  %s1399_s6 = inlined_call_operand.vmem [shape: f32[1,128], index: 6, kind: input, shape index: {}]   ;;  %s1400_s7 = inlined_call_operand.hbm [shape: f32[8,128], index: 7, kind: output, shape index: {}]  }
   0x1   :  { %13 = vsyncpa [#allocation7], 0 }
   0x2   :  { %14 = vsyncpa [#allocation10], 0 }
   0x3   :  { %15 = vsyncpa [#allocation13], 0  ;;  %s35_s26 = sshll.u32 %s1394_s1, 4  ;;  %s36_s26 = int_to_ptr.hbm [resolvable:$true] %s35_s26 }
   0x4   :  { %16 = vsyncpa [#allocation5], 0  ;;  %s1298_s27 = smov [#allocation6]   ;;  %s58_s8 = sshll.u32 %s1396_s3, 4  ;;  %s59_s8 = int_to_ptr.hbm [resolvable:$true] %s58_s8 }
   0x5   :  { %s37_s28 = sshll.u32 %s1298_s27, 4  ;;  %s1299_s9 = smov [#allocation9]   ;;  %s38_s28 = int_to_ptr.vmem [resolvable:$true] %s37_s28 }
   0x6   :  { %40 = dma.hbm_to_vmem [thread:$0]  %s36_s26, 64, %s38_s28, [#allocation7]  }
   0x7   :  { %s60_s10 = sshll.u32 %s1299_s9, 4  ;;  %s21_s13 = sshll.u32 %s1393_s0, 4  ;;  %s61_s10 = int_to_ptr.vmem [resolvable:$true] %s60_s10  ;;  %s22_s13 = int_to_ptr.hbm [resolvable:$true] %s21_s13 }
   0x8   :  { %s1300_s1 = smov 256   ;;  %s1301_s14 = smov 16  }
   0x9   :  { %66 = dma.hbm_to_vmem [thread:$0]  %s59_s8, 1024, %s61_s10, [#allocation10], %s1300_s1, %s1300_s1, %s1301_s14  }
   0xa   :  { %s1302_s15 = smov [#allocation3]   ;;  %s45_s19 = sshll.u32 %s1395_s2, 4  ;;  %s46_s19 = int_to_ptr.hbm [resolvable:$true] %s45_s19 }
   0xb   :  { %s23_s16 = sshll.u32 %s1302_s15, 4  ;;  %s1303_s3 = smov 64   ;;  %s24_s16 = int_to_ptr.vmem [resolvable:$true] %s23_s16 }
   0xc   :  { %s1304_s20 = smov 4   ;;  %s1305_s21 = smov [#allocation8]  }
   0xd   :  { %29 = dma.hbm_to_vmem [thread:$0]  %s22_s13, 512, %s24_s16, [#allocation4], %s1303_s3, %s1303_s3, %s1304_s20  }
   0xe   :  { %s47_s22 = sshll.u32 %s1305_s21, 4  ;;  %s72_s24 = sshll.u32 %s1397_s4, 4  ;;  %s48_s22 = int_to_ptr.vmem [resolvable:$true] %s47_s22  ;;  %s73_s24 = int_to_ptr.hbm [resolvable:$true] %s72_s24 }
   0xf   :  { %53 = dma.hbm_to_vmem [thread:$0]  %s46_s19, 1024, %s48_s22, [#allocation7], %s1300_s1, %s1300_s1, %s1301_s14  }
  0x10   :  { %s82_s27 = sshll.u32 %s1398_s5, 4  ;;  %s1306_s28 = smov [#allocation11]   ;;  %s83_s27 = int_to_ptr.hbm [resolvable:$true] %s82_s27 }
  0x11   :  { %s74_s29 = sshll.u32 %s1306_s28, 4  ;;  %s1307_s2 = smov [#allocation12]   ;;  %s75_s29 = int_to_ptr.vmem [resolvable:$true] %s74_s29 }
  0x12   :  { %77 = dma.hbm_to_vmem [thread:$0]  %s73_s24, 64, %s75_s29, [#allocation10]  }
  0x13   :  { %s84_s30 = sshll.u32 %s1307_s2, 4  ;;  %s85_s30 = int_to_ptr.vmem [resolvable:$true] %s84_s30 }
  0x14   :  { %90 = dma.hbm_to_vmem [thread:$0]  %s83_s27, 4096, %s85_s30, [#allocation13], %s1303_s3, %s1303_s3, %s1304_s20  }
  0x15   :  { %1288 = dma.done.wait [#allocation4], 512  }
  0x16   :  { %1289 = vsyncadd [#allocation4], 4294966784 }
  0x17   :  { %1290 = dma.done.wait [#allocation7], 1088  }
  0x18   :  { %1291 = vsyncadd [#allocation7], 4294966208 }
  0x19   :  { %1292 = dma.done.wait [#allocation10], 1088  }
  0x1a   :  { %1293 = vsyncadd [#allocation10], 4294966208 }
  0x1b   :  { %1294 = dma.done.wait [#allocation13], 4096  }
  0x1c   :  { %1295 = vsyncadd [#allocation13], 4294963200  ;;  %vm122_vm0 = vcmask 261120   ;;  %v1308_v0 = vmov 0.0   ;;  %v866_v1 = vld [vmem:[#allocation9 + $0x28] sm:$0xf] }
  0x1d   :  { %123 = vst.msk [vmem:[#allocation2] sm:$0xff] %vm122_vm0, %v1308_v0  ;;  %v1055_v2 = vld [vmem:[#allocation9 + $0x34] sm:$0xf0]  ;;  %v1053_v3 = vld [vmem:[#allocation9 + $0x2c] sm:$0xf]  ;;  %v1089_v26 = vld [vmem:[#allocation3] sm:$0xff]  }
  0x1e   :  { %v867_v4 = vor.u32 %v1055_v2, %v866_v1  ;;  %v868_v5 = vld [vmem:[#allocation9 + $0x38] sm:$0xf0]  ;;  %v850_v6 = vld [vmem:[#allocation9 + $0x8] sm:$0xf]  ;;  %v1051_v7 = vld [vmem:[#allocation9 + $0x14] sm:$0xf0]  ;;  %v1090_v37 = vunpack.c.l.bf16 %v1089_v26  ;;  %v1091_v38 = vunpack.c.h.bf16 %v1089_v26 }
  0x1f   :  { %v871_v8 = vor.u32 %v1053_v3, %v868_v5  ;;  %v1049_v9 = vld [vmem:[#allocation9 + $0xc] sm:$0xf]  ;;  %v852_v10 = vld [vmem:[#allocation9 + $0x18] sm:$0xf0]  ;;  %v851_v12 = vor.u32 %v1051_v7, %v850_v6  ;;  %v858_v14 = vld [vmem:[#allocation9 + $0x20] sm:$0xf] }
  0x20   :  { %v279_v11 = vld [vmem:[#allocation6] sm:$0xf]  ;;  %374 = vmatpush.bf16.msra.mxu2 %v867_v4  ;;  %v1054_v15 = vld [vmem:[#allocation9 + $0x2c] sm:$0xf0]  ;;  %v1052_v16 = vld [vmem:[#allocation9 + $0x24] sm:$0xf]  ;;  %v855_v17 = vor.u32 %v1049_v9, %v852_v10 }
  0x21   :  { %v280_v13 = vunpack.c.l.bf16 %v279_v11  ;;  %387 = vmatpush.bf16.msra.mxu3 %v871_v8  ;;  %v859_v18 = vor.u32 %v1054_v15, %v858_v14  ;;  %v860_v19 = vld [vmem:[#allocation9 + $0x30] sm:$0xf0]  ;;  %v842_v20 = vld [vmem:[#allocation9] sm:$0xf]  ;;  %v1050_v21 = vld [vmem:[#allocation9 + $0xc] sm:$0xf0] }
  0x22   :  { %v863_v23 = vor.u32 %v1052_v16, %v860_v19  ;;  %v1048_v24 = vld [vmem:[#allocation9 + $0x4] sm:$0xf]  ;;  %v844_v25 = vld [vmem:[#allocation9 + $0x10] sm:$0xf0]  ;;  %v843_v27 = vor.u32 %v1050_v21, %v842_v20  ;;  %v902_v29 = vld [vmem:[#allocation8 + $0x28] sm:$0xf] }
  0x23   :  { %v281_v22 = vmax.f32 %v280_v13, 0.0  ;;  %348 = vmatpush.bf16.msra.mxu0 %v859_v18  ;;  %v847_v28 = vor.u32 %v1048_v24, %v844_v25  ;;  %v1047_v30 = vld [vmem:[#allocation8 + $0x34] sm:$0xf0]  ;;  %v1045_v31 = vld [vmem:[#allocation8 + $0x2c] sm:$0xf]  ;;  %v1104_v55 = vld [vmem:[#allocation3 + $0x8] sm:$0xff]  }
  0x24   :  { %375 = vmatpush.bf16.msra.mxu2 %v851_v12  ;;  %361 = vmatpush.bf16.msra.mxu1 %v863_v23  ;;  %v903_v33 = vor.u32 %v1047_v30, %v902_v29  ;;  %v904_v34 = vld [vmem:[#allocation8 + $0x38] sm:$0xf0]  ;;  %v886_v35 = vld [vmem:[#allocation8 + $0x8] sm:$0xf]  ;;  %v1043_v36 = vld [vmem:[#allocation8 + $0x14] sm:$0xf0]  ;;  %v1094_v60 = vunpack.c.l.bf16 %v1104_v55  ;;  %v1095_v61 = vunpack.c.h.bf16 %v1104_v55 }
  0x25   :  { %v282_v32 = vpack.c.bf16 %v281_v22, %v281_v22  ;;  %388 = vmatpush.bf16.msra.mxu3 %v855_v17  ;;  %v907_v39 = vor.u32 %v1045_v31, %v904_v34  ;;  %v1041_v40 = vld [vmem:[#allocation8 + $0xc] sm:$0xf]  ;;  %v888_v41 = vld [vmem:[#allocation8 + $0x18] sm:$0xf0]  ;;  %v894_v42 = vld [vmem:[#allocation8 + $0x20] sm:$0xf]  ;;  %v887_v43 = vor.u32 %v1043_v36, %v886_v35 }
  0x26   :  { %v1046_v44 = vld [vmem:[#allocation8 + $0x2c] sm:$0xf0]  ;;  %v1044_v45 = vld [vmem:[#allocation8 + $0x24] sm:$0xf]  ;;  %v896_v46 = vld [vmem:[#allocation8 + $0x30] sm:$0xf0]  ;;  %v891_v47 = vor.u32 %v1041_v40, %v888_v41 }
  0x27   :  { %874 = vmatmul.msk.bf16.vlgmr.msra.gmra.mxu2 %vm122_vm0, %v282_v32  ;;  %349 = vmatpush.bf16.msra.mxu0 %v843_v27  ;;  %v895_v48 = vor.u32 %v1046_v44, %v894_v42  ;;  %v878_v49 = vld [vmem:[#allocation8] sm:$0xf]  ;;  %v1042_v50 = vld [vmem:[#allocation8 + $0xc] sm:$0xf0]  ;;  %v1040_v51 = vld [vmem:[#allocation8 + $0x4] sm:$0xf]  ;;  %v899_v52 = vor.u32 %v1044_v45, %v896_v46 }
  0x28   :  { %469 = vmatpush.bf16.msrb.mxu2 %v903_v33  ;;  %875 = vmatmul.msk.bf16.vlgmr.msra.gmra.mxu3 %vm122_vm0, %v282_v32  ;;  %v879_v53 = vor.u32 %v1042_v50, %v878_v49  ;;  %v880_v54 = vld [vmem:[#allocation8 + $0x10] sm:$0xf0]  ;;  %v1105_v56 = vld [vmem:[#allocation3 + $0x10] sm:$0xff]   ;;  %v148_v57 = vrot.slane %v1090_v37, 4  ;;  %v149_v58 = vrot.slane %v1091_v38, 4  ;;  %v150_v4 = vrot.slane %v1094_v60, 4 }
  0x29   :  { %362 = vmatpush.bf16.msra.mxu1 %v847_v28  ;;  %482 = vmatpush.bf16.msrb.mxu3 %v907_v39  ;;  %v883_v59 = vor.u32 %v1040_v51, %v880_v54  ;;  %v1098_v62 = vunpack.c.l.bf16 %v1105_v56  ;;  %v1106_v63 = vld [vmem:[#allocation3 + $0x18] sm:$0xff]   ;;  %v1099_v0 = vunpack.c.h.bf16 %v1105_v56  ;;  %v151_v5 = vrot.slane %v1095_v61, 4  ;;  %s1309_s8 = smov [#allocation14]   ;;  %s827_s12 = sshll.u32 %s1400_s7, 4  ;;  %s828_s12 = int_to_ptr.hbm [resolvable:$true] %s827_s12 }
  0x2a   :  { %872 = vmatmul.msk.bf16.vlgmr.msra.gmra.mxu0 %vm122_vm0, %v282_v32  ;;  %v1102_v1 = vunpack.c.l.bf16 %v1106_v63  ;;  %v1103_v2 = vunpack.c.h.bf16 %v1106_v63  ;;  %v164_v3 = vadd.f32 %v1090_v37, %v148_v57  ;;  %v165_v7 = vadd.f32 %v1091_v38, %v149_v58  ;;  %s825_s9 = sshll.u32 %s1309_s8, 4  ;;  %s826_s9 = int_to_ptr.vmem [resolvable:$true] %s825_s9 }
  0x2b   :  { %443 = vmatpush.bf16.msrb.mxu0 %v895_v48  ;;  %v152_v6 = vrot.slane %v1098_v62, 4  ;;  %v153_v8 = vrot.slane %v1099_v0, 4  ;;  %v166_v12 = vadd.f32 %v1094_v60, %v150_v4  ;;  %v167_v13 = vadd.f32 %v1095_v61, %v151_v5  ;;  %v1071_v60 = vld [vmem:[#allocation12 + $0x78] sm:$0xff]  ;;  %v1062_v5 = vld [vmem:[#allocation12 + $0x30] sm:$0xff] }
  0x2c   :  { %470 = vmatpush.bf16.msrb.mxu2 %v887_v43  ;;  %873 = vmatmul.msk.bf16.vlgmr.msra.gmra.mxu1 %vm122_vm0, %v282_v32  ;;  %v154_v9 = vrot.slane %v1102_v1, 4  ;;  %v155_v10 = vrot.slane %v1103_v2, 4  ;;  %v172_v11 = vpack.c.bf16 %v164_v3, %v164_v3  ;;  %vm189_vm1 = vcmask 257024  }
  0x2d   :  { %456 = vmatpush.bf16.msrb.mxu1 %v899_v52  ;;  %483 = vmatpush.bf16.msrb.mxu3 %v891_v47  ;;  %v168_v14 = vadd.f32 %v1098_v62, %v152_v6  ;;  %v169_v15 = vadd.f32 %v1099_v0, %v153_v8  ;;  %v173_v18 = vpack.c.bf16 %v165_v7, %v165_v7  ;;  %vm254_vm2 = vcmask 1041409   ;;  %v1070_v6 = vld [vmem:[#allocation12 + $0x70] sm:$0xff] }
  0x2e   :  { %v170_v16 = vadd.f32 %v1102_v1, %v154_v9  ;;  %v171_v17 = vadd.f32 %v1103_v2, %v155_v10  ;;  %v174_v19 = vpack.c.bf16 %v166_v12, %v166_v12  ;;  %v175_v20 = vpack.c.bf16 %v167_v13, %v167_v13 }
  0x2f   :  { %444 = vmatpush.bf16.msrb.mxu0 %v879_v53  ;;  %v176_v21 = vpack.c.bf16 %v168_v14, %v168_v14  ;;  %v181_v22 = vunpack.c.l.bf16 %v172_v11  ;;  %v177_v23 = vpack.c.bf16 %v169_v15, %v169_v15  ;;  %v182_v26 = vunpack.c.l.bf16 %v173_v18 }
  0x30   :  { %v178_v24 = vpack.c.bf16 %v170_v16, %v170_v16  ;;  %v179_v25 = vpack.c.bf16 %v171_v17, %v171_v17  ;;  %v183_v27 = vunpack.c.l.bf16 %v174_v19  ;;  %v184_v28 = vunpack.c.l.bf16 %v175_v20 }
  0x31   :  { %457 = vmatpush.bf16.msrb.mxu1 %v883_v59  ;;  %v185_v29 = vunpack.c.l.bf16 %v176_v21  ;;  %v190_v30 = vsel %vm189_vm1, %v181_v22, 0.0  ;;  %v186_v31 = vunpack.c.l.bf16 %v177_v23  ;;  %v197_v35 = vsel %vm189_vm1, %v182_v26, 0.0  ;;  %v1063_v59 = vld [vmem:[#allocation12 + $0x38] sm:$0xff] }
  0x32   :  { %v187_v32 = vunpack.c.l.bf16 %v178_v24  ;;  %v188_v33 = vunpack.c.l.bf16 %v179_v25  ;;  %v191_v34 = vrot.slane %v190_v30, 4  ;;  %v204_v36 = vsel %vm189_vm1, %v183_v27, 0.0 }
  0x33   :  { %v211_v37 = vsel %vm189_vm1, %v184_v28, 0.0  ;;  %v218_v38 = vsel %vm189_vm1, %v185_v29, 0.0  ;;  %v198_v40 = vrot.slane %v197_v35, 4  ;;  %v205_v41 = vrot.slane %v204_v36, 4  ;;  %767 = vmatpush.bf16.msra.mxu0 %v1063_v59  ;;  %v1083_v59 = vld [vmem:[#allocation12 + $0xd8] sm:$0xff] }
  0x34   :  { %v192_v39 = vadd.f32 %v191_v34, %v190_v30  ;;  %v212_v42 = vrot.slane %v211_v37, 4  ;;  %v219_v43 = vrot.slane %v218_v38, 4  ;;  %v225_v44 = vsel %vm189_vm1, %v186_v31, 0.0 }
  0x35   :  { %v232_v45 = vsel %vm189_vm1, %v187_v32, 0.0  ;;  %v239_v46 = vsel %vm189_vm1, %v188_v33, 0.0  ;;  %v199_v48 = vadd.f32 %v198_v40, %v197_v35  ;;  %v206_v49 = vadd.f32 %v205_v41, %v204_v36  ;;  %780 = vmatpush.bf16.msra.mxu1 %v1071_v60  ;;  %v180_v33 = vld [vmem:[#allocation2] sm:$0xff] }
  0x36   :  { %v193_v47 = vrot.slane %v192_v39, 2  ;;  %v213_v50 = vadd.f32 %v212_v42, %v211_v37  ;;  %v220_v51 = vadd.f32 %v219_v43, %v218_v38  ;;  %v226_v52 = vrot.slane %v225_v44, 4  ;;  %v1079_v42 = vld [vmem:[#allocation12 + $0xb8] sm:$0xff] }
  0x37   :  { %v233_v53 = vrot.slane %v232_v45, 4  ;;  %v240_v54 = vrot.slane %v239_v46, 4  ;;  %v200_v56 = vrot.slane %v199_v48, 2  ;;  %v207_v57 = vrot.slane %v206_v49, 2  ;;  %768 = vmatpush.bf16.msra.mxu0 %v1062_v5  ;;  %v1087_v43 = vld [vmem:[#allocation12 + $0xf8] sm:$0xff]  ;;  %793 = vmatpush.bf16.msra.mxu2 %v1079_v42  ;;  %v1065_v5 = vld [vmem:[#allocation12 + $0x48] sm:$0xff] }
  0x38   :  { %v194_v55 = vadd.f32 %v193_v47, %v192_v39  ;;  %v214_v58 = vrot.slane %v213_v50, 2  ;;  %v221_v61 = vrot.slane %v220_v51, 2  ;;  %v227_v62 = vadd.f32 %v226_v52, %v225_v44  ;;  %v1061_v44 = vld [vmem:[#allocation12 + $0x28] sm:$0xff]  ;;  %806 = vmatpush.bf16.msra.mxu3 %v1087_v43  ;;  %v1086_v47 = vld [vmem:[#allocation12 + $0xf0] sm:$0xff]  ;;  %v1059_v52 = vld [vmem:[#allocation12 + $0x18] sm:$0xff] }
  0x39   :  { %v234_v63 = vadd.f32 %v233_v53, %v232_v45  ;;  %v241_v0 = vadd.f32 %v240_v54, %v239_v46  ;;  %v201_v2 = vadd.f32 %v200_v56, %v199_v48  ;;  %v208_v3 = vadd.f32 %v207_v57, %v206_v49  ;;  %781 = vmatpush.bf16.msra.mxu1 %v1070_v6  ;;  %v1069_v45 = vld [vmem:[#allocation12 + $0x68] sm:$0xff]  ;;  %v1078_v46 = vld [vmem:[#allocation12 + $0xb0] sm:$0xff]  ;;  %v1060_v48 = vld [vmem:[#allocation12 + $0x20] sm:$0xff] }
  0x3a   :  { %v195_v1 = vrot.slane %v194_v55, 1  ;;  %v215_v4 = vadd.f32 %v214_v58, %v213_v50  ;;  %v222_v7 = vadd.f32 %v221_v61, %v220_v51  ;;  %v228_v8 = vrot.slane %v227_v62, 2  ;;  %v1068_v49 = vld [vmem:[#allocation12 + $0x60] sm:$0xff]  ;;  %v1077_v50 = vld [vmem:[#allocation12 + $0xa8] sm:$0xff]  ;;  %v1067_v53 = vld [vmem:[#allocation12 + $0x58] sm:$0xff] }
  0x3b   :  { %v235_v9 = vrot.slane %v234_v63, 2  ;;  %v242_v10 = vrot.slane %v241_v0, 2  ;;  %v202_v12 = vrot.slane %v201_v2, 1  ;;  %v209_v13 = vrot.slane %v208_v3, 1  ;;  %769 = vmatpush.bf16.msra.mxu0 %v1061_v44  ;;  %794 = vmatpush.bf16.msra.mxu2 %v1078_v46  ;;  %v1085_v51 = vld [vmem:[#allocation12 + $0xe8] sm:$0xff]  ;;  %v1076_v54 = vld [vmem:[#allocation12 + $0xa0] sm:$0xff] }
  0x3c   :  { %v196_v11 = vadd.f32 %v195_v1, %v194_v55  ;;  %v216_v14 = vrot.slane %v215_v4, 1  ;;  %v223_v15 = vrot.slane %v222_v7, 1  ;;  %v229_v16 = vadd.f32 %v228_v8, %v227_v62  ;;  %807 = vmatpush.bf16.msra.mxu3 %v1086_v47  ;;  %v1084_v55 = vld [vmem:[#allocation12 + $0xe0] sm:$0xff]  ;;  %v1058_v56 = vld [vmem:[#allocation12 + $0x10] sm:$0xff]  ;;  %v1075_v58 = vld [vmem:[#allocation12 + $0x98] sm:$0xff] }
  0x3d   :  { %v236_v17 = vadd.f32 %v235_v9, %v234_v63  ;;  %v243_v18 = vadd.f32 %v242_v10, %v241_v0  ;;  %v203_v19 = vadd.f32 %v202_v12, %v201_v2  ;;  %v210_v20 = vadd.f32 %v209_v13, %v208_v3  ;;  %782 = vmatpush.bf16.msra.mxu1 %v1069_v45  ;;  %v1066_v57 = vld [vmem:[#allocation12 + $0x50] sm:$0xff]  ;;  %v1056_v8 = vld [vmem:[#allocation12] sm:$0xff]  ;;  %v1073_v10 = vld [vmem:[#allocation12 + $0x88] sm:$0xff] }
  0x3e   :  { %v217_v21 = vadd.f32 %v216_v14, %v215_v4  ;;  %vm256_vm3 = vcmask 1042434   ;;  %v224_v22 = vadd.f32 %v223_v15, %v222_v7  ;;  %v230_v23 = vrot.slane %v229_v16, 1  ;;  %v1057_v4 = vld [vmem:[#allocation12 + $0x8] sm:$0xff]  ;;  %v1074_v6 = vld [vmem:[#allocation12 + $0x90] sm:$0xff]  ;;  %v1064_v9 = vld [vmem:[#allocation12 + $0x40] sm:$0xff] }
  0x3f   :  { %v237_v24 = vrot.slane %v236_v17, 1  ;;  %v244_v25 = vrot.slane %v243_v18, 1  ;;  %v255_v26 = vsel %vm254_vm2, %v203_v19, %v196_v11  ;;  %vm258_vm4 = vcmask 1043459   ;;  %770 = vmatpush.bf16.msra.mxu0 %v1060_v48  ;;  %795 = vmatpush.bf16.msra.mxu2 %v1077_v50  ;;  %v1082_v7 = vld [vmem:[#allocation12 + $0xd0] sm:$0xff]  ;;  %v1081_v11 = vld [vmem:[#allocation12 + $0xc8] sm:$0xff]  ;;  %v1072_v12 = vld [vmem:[#allocation12 + $0x80] sm:$0xff] }
  0x40   :  { %vm260_vm5 = vcmask 1044484   ;;  %v231_v27 = vadd.f32 %v230_v23, %v229_v16  ;;  %v257_v29 = vsel %vm256_vm3, %v210_v20, %v255_v26  ;;  %vm262_vm6 = vcmask 1045509   ;;  %808 = vmatpush.bf16.msra.mxu3 %v1085_v51  ;;  %v1080_v13 = vld [vmem:[#allocation12 + $0xc0] sm:$0xff]  ;;  %v489_v14 = vld [vmem:[#allocation11] sm:$0xf] }
  0x41   :  { %v238_v28 = vadd.f32 %v237_v24, %v236_v17  ;;  %v245_v30 = vadd.f32 %v244_v25, %v243_v18  ;;  %v259_v31 = vsel %vm258_vm4, %v217_v21, %v257_v29  ;;  %vm264_vm7 = vcmask 1046534   ;;  %783 = vmatpush.bf16.msra.mxu1 %v1068_v49 }
  0x42   :  { %v261_v32 = vsel %vm260_vm5, %v224_v22, %v259_v31  ;;  %vm266_vm8 = vcmask 1047559   ;;  %v491_v15 = vperm.slane %v489_v14, 0  ;;  %v492_v16 = vperm.slane %v489_v14, 1 }
  0x43   :  { %v263_v34 = vsel %vm262_vm6, %v231_v27, %v261_v32  ;;  %771 = vmatpush.bf16.msra.mxu0 %v1059_v52  ;;  %796 = vmatpush.bf16.msra.mxu2 %v1076_v54  ;;  %v493_v25 = vperm.slane %v489_v14, 2  ;;  %v494_v26 = vperm.slane %v489_v14, 3 }
  0x44   :  { %v265_v35 = vsel %vm264_vm7, %v238_v28, %v263_v34  ;;  %809 = vmatpush.bf16.msra.mxu3 %v1084_v55 }
  0x45   :  { %v267_v36 = vsel %vm266_vm8, %v245_v30, %v265_v35  ;;  %784 = vmatpush.bf16.msra.mxu1 %v1067_v53 }
  0x46   :  { %v269_v37 = vadd.f32 %v267_v36, %v180_v33 }
  0x47   :  { %772 = vmatpush.bf16.msra.mxu0 %v1058_v56  ;;  %797 = vmatpush.bf16.msra.mxu2 %v1075_v58 }
  0x48   :  { %271 = vst.msk [vmem:[#allocation2] sm:$0xff] %vm122_vm0, %v269_v37  ;;  %810 = vmatpush.bf16.msra.mxu3 %v1083_v59 }
  0x49   :  { %785 = vmatpush.bf16.msra.mxu1 %v1066_v57 }
  0x4b   :  { %773 = vmatpush.bf16.msra.mxu0 %v1057_v4  ;;  %798 = vmatpush.bf16.msra.mxu2 %v1074_v6 }
  0x4c   :  { %811 = vmatpush.bf16.msra.mxu3 %v1082_v7 }
  0x4d   :  { %786 = vmatpush.bf16.msra.mxu1 %v1065_v5 }
  0x4f   :  { %v275_v38 = vld [vmem:[#allocation2] sm:$0xff]  ;;  %774 = vmatpush.bf16.msra.mxu0 %v1056_v8  ;;  %799 = vmatpush.bf16.msra.mxu2 %v1073_v10 }
  0x50   :  { %v276_v39 = vmul.f32 0.125, %v275_v38  ;;  %812 = vmatpush.bf16.msra.mxu3 %v1081_v11 }
  0x51   :  { %787 = vmatpush.bf16.msra.mxu1 %v1064_v9 }
  0x52   :  { %v277_v40 = vmax.f32 %v276_v39, 0.0 }
  0x53   :  { %800 = vmatpush.bf16.msra.mxu2 %v1072_v12 }
  0x54   :  { %v278_v41 = vpack.c.bf16 %v277_v40, %v277_v40  ;;  %813 = vmatpush.bf16.msra.mxu3 %v1080_v13 }
  0x56   :  { %908 = vmatmul.msk.bf16.vlgmr.msrb.gmra.mxu0 %vm122_vm0, %v278_v41  ;;  %909 = vmatmul.msk.bf16.vlgmr.msrb.gmra.mxu1 %vm122_vm0, %v278_v41 }
  0x57   :  { %910 = vmatmul.msk.bf16.vlgmr.msrb.gmra.mxu2 %vm122_vm0, %v278_v41  ;;  %911 = vmatmul.msk.bf16.vlgmr.msrb.gmra.mxu3 %vm122_vm0, %v278_v41  ;;  %v1119_v41 = vld [vmem:[%s1399_s6] ss:$0 sm:$0xff] }
  0xa7   :  { %v351_v60 = vpop.f32.mrf.mxu0 }
  0xa9   :  { %v364_v61 = vpop.f32.mrf.mxu1 }
  0xaa   :  { %v377_v62 = vpop.f32.mrf.mxu2 }
  0xab   :  { %v390_v63 = vpop.f32.mrf.mxu3 }
  0xaf   :  { %v353_v0 = vpop.f32.mrf.mxu0 }
  0xb1   :  { %v366_v1 = vpop.f32.mrf.mxu1 }
  0xb2   :  { %v379_v2 = vpop.f32.mrf.mxu2 }
  0xb3   :  { %v392_v3 = vpop.f32.mrf.mxu3 }
  0xd3   :  { %v446_v17 = vpop.f32.mrf.mxu0  ;;  %v459_v18 = vpop.f32.mrf.mxu1 }
  0xd4   :  { %v447_v19 = vadd.f32 %v446_v17, %v351_v60  ;;  %v460_v20 = vadd.f32 %v459_v18, %v364_v61 }
  0xd6   :  { %v499_v21 = vadd.f32 %v491_v15, %v447_v19  ;;  %v500_v22 = vadd.f32 %v492_v16, %v460_v20 }
  0xd8   :  { %v503_v23 = vpack.c.bf16 %v499_v21, %v499_v21  ;;  %v504_v24 = vpack.c.bf16 %v500_v22, %v500_v22 }
  0xda   :  { %v472_v27 = vpop.f32.mrf.mxu2  ;;  %v485_v28 = vpop.f32.mrf.mxu3  ;;  %775 = vmatmul.bf16.vlgmr.msra.gmra.mxu0 %v503_v23  ;;  %788 = vmatmul.bf16.vlgmr.msra.gmra.mxu1 %v504_v24 }
  0xdb   :  { %v473_v29 = vadd.f32 %v472_v27, %v377_v62  ;;  %v486_v30 = vadd.f32 %v485_v28, %v390_v63  ;;  %v448_v31 = vpop.f32.mrf.mxu0  ;;  %v461_v32 = vpop.f32.mrf.mxu1 }
  0xdd   :  { %v501_v33 = vadd.f32 %v493_v25, %v473_v29  ;;  %v502_v34 = vadd.f32 %v494_v26, %v486_v30 }
  0xdf   :  { %v505_v35 = vpack.c.bf16 %v501_v33, %v501_v33  ;;  %v506_v36 = vpack.c.bf16 %v502_v34, %v502_v34 }
  0xe1   :  { %801 = vmatmul.bf16.vlgmr.msra.gmra.mxu2 %v505_v35  ;;  %814 = vmatmul.bf16.vlgmr.msra.gmra.mxu3 %v506_v36 }
  0xe2   :  { %v474_v37 = vpop.f32.mrf.mxu2  ;;  %v487_v38 = vpop.f32.mrf.mxu3 }
 0x157   :  { %v776_v39 = vpop.f32.mrf.mxu0  ;;  %v789_v40 = vpop.f32.mrf.mxu1 }
 0x158   :  { %v777_v42 = vadd.f32 %v1119_v41, %v776_v39 }
 0x15a   :  { %v790_v45 = vadd.f32 %v789_v40, %v777_v42 }
 0x15f   :  { %v778_v43 = vpop.f32.mrf.mxu0  ;;  %v791_v44 = vpop.f32.mrf.mxu1 }
 0x164   :  { %v802_v46 = vpop.f32.mrf.mxu2  ;;  %v815_v47 = vpop.f32.mrf.mxu3 }
 0x165   :  { %v803_v48 = vadd.f32 %v802_v46, %v790_v45 }
 0x167   :  { %v816_v49 = vadd.f32 %v815_v47, %v803_v48 }
 0x169   :  { %819 = vst [vmem:[#allocation14] sm:$0xff] %v816_v49 }
 0x16a   :  { %830 = dma.vmem_to_hbm [thread:$0]  %s826_s9, 128, %s828_s12, [#allocation5]  }
 0x16c   :  { %v804_v50 = vpop.f32.mrf.mxu2  ;;  %v817_v51 = vpop.f32.mrf.mxu3 }
 0x16d   :  { %1296 = dma.done.wait [#allocation5], 128  }
 0x16e   :  { %1297 = vsyncadd [#allocation5], 4294967168 }
 0x16f   :  { %835 = vsyncpa [#allocation4], 1 }
 0x170   :  { %836 = vsyncpa [#allocation7], 1 }
 0x171   :  { %837 = vsyncpa [#allocation10], 1 }
 0x172   :  { %838 = vsyncpa [#allocation13], 1 }
 0x173   :  { %839 = vsyncpa [#allocation5], 1 }

// kernel: tpu_custom_call.1
= control target key start
LH: loop header
LB: loop body
LE: loop exit
PB: predicated region body
PF: predicated region fallthrough
CT: control target
= control target key end

     0   :  { %12 = vsyncpa [#allocation4], 0  ;;  %s1393_s0 = inlined_call_operand.hbm [shape: bf16[8,8,32], index: 0, kind: input, shape index: {}]   ;;  %s1394_s1 = inlined_call_operand.hbm [shape: bf16[8,32], index: 1, kind: input, shape index: {}]   ;;  %s1395_s2 = inlined_call_operand.hbm [shape: bf16[32,512], index: 2, kind: input, shape index: {}]   ;;  %s1396_s3 = inlined_call_operand.hbm [shape: bf16[32,512], index: 3, kind: input, shape index: {}]   ;;  %s1397_s4 = inlined_call_operand.hbm [shape: f32[1,512], index: 4, kind: input, shape index: {}]   ;;  %s1398_s5 = inlined_call_operand.hbm [shape: bf16[512,128], index: 5, kind: input, shape index: {}]   ;;  %s1399_s6 = inlined_call_operand.vmem [shape: f32[1,128], index: 6, kind: input, shape index: {}]   ;;  %s1400_s7 = inlined_call_operand.hbm [shape: f32[8,128], index: 7, kind: output, shape index: {}]  }
   0x1   :  { %13 = vsyncpa [#allocation7], 0 }
   0x2   :  { %14 = vsyncpa [#allocation10], 0 }
   0x3   :  { %15 = vsyncpa [#allocation13], 0  ;;  %s35_s26 = sshll.u32 %s1394_s1, 4  ;;  %s36_s26 = int_to_ptr.hbm [resolvable:$true] %s35_s26 }
   0x4   :  { %16 = vsyncpa [#allocation5], 0  ;;  %s1298_s27 = smov [#allocation6]   ;;  %s58_s8 = sshll.u32 %s1396_s3, 4  ;;  %s59_s8 = int_to_ptr.hbm [resolvable:$true] %s58_s8 }
   0x5   :  { %s37_s28 = sshll.u32 %s1298_s27, 4  ;;  %s1299_s9 = smov [#allocation9]   ;;  %s38_s28 = int_to_ptr.vmem [resolvable:$true] %s37_s28 }
   0x6   :  { %40 = dma.hbm_to_vmem [thread:$0]  %s36_s26, 64, %s38_s28, [#allocation7]  }
   0x7   :  { %s60_s10 = sshll.u32 %s1299_s9, 4  ;;  %s21_s13 = sshll.u32 %s1393_s0, 4  ;;  %s61_s10 = int_to_ptr.vmem [resolvable:$true] %s60_s10  ;;  %s22_s13 = int_to_ptr.hbm [resolvable:$true] %s21_s13 }
   0x8   :  { %s1300_s1 = smov 256   ;;  %s1301_s14 = smov 16  }
   0x9   :  { %66 = dma.hbm_to_vmem [thread:$0]  %s59_s8, 1024, %s61_s10, [#allocation10], %s1300_s1, %s1300_s1, %s1301_s14  }
   0xa   :  { %s1302_s15 = smov [#allocation3]   ;;  %s45_s19 = sshll.u32 %s1395_s2, 4  ;;  %s46_s19 = int_to_ptr.hbm [resolvable:$true] %s45_s19 }
   0xb   :  { %s23_s16 = sshll.u32 %s1302_s15, 4  ;;  %s1303_s3 = smov 64   ;;  %s24_s16 = int_to_ptr.vmem [resolvable:$true] %s23_s16 }
   0xc   :  { %s1304_s20 = smov 4   ;;  %s1305_s21 = smov [#allocation8]  }
   0xd   :  { %29 = dma.hbm_to_vmem [thread:$0]  %s22_s13, 512, %s24_s16, [#allocation4], %s1303_s3, %s1303_s3, %s1304_s20  }
   0xe   :  { %s47_s22 = sshll.u32 %s1305_s21, 4  ;;  %s72_s24 = sshll.u32 %s1397_s4, 4  ;;  %s48_s22 = int_to_ptr.vmem [resolvable:$true] %s47_s22  ;;  %s73_s24 = int_to_ptr.hbm [resolvable:$true] %s72_s24 }
   0xf   :  { %53 = dma.hbm_to_vmem [thread:$0]  %s46_s19, 1024, %s48_s22, [#allocation7], %s1300_s1, %s1300_s1, %s1301_s14  }
  0x10   :  { %s82_s27 = sshll.u32 %s1398_s5, 4  ;;  %s1306_s28 = smov [#allocation11]   ;;  %s83_s27 = int_to_ptr.hbm [resolvable:$true] %s82_s27 }
  0x11   :  { %s74_s29 = sshll.u32 %s1306_s28, 4  ;;  %s1307_s2 = smov [#allocation12]   ;;  %s75_s29 = int_to_ptr.vmem [resolvable:$true] %s74_s29 }
  0x12   :  { %77 = dma.hbm_to_vmem [thread:$0]  %s73_s24, 64, %s75_s29, [#allocation10]  }
  0x13   :  { %s84_s30 = sshll.u32 %s1307_s2, 4  ;;  %s85_s30 = int_to_ptr.vmem [resolvable:$true] %s84_s30 }
  0x14   :  { %90 = dma.hbm_to_vmem [thread:$0]  %s83_s27, 4096, %s85_s30, [#allocation13], %s1303_s3, %s1303_s3, %s1304_s20  }
  0x15   :  { %1288 = dma.done.wait [#allocation4], 512  }
  0x16   :  { %1289 = vsyncadd [#allocation4], 4294966784 }
  0x17   :  { %1290 = dma.done.wait [#allocation7], 1088  }
  0x18   :  { %1291 = vsyncadd [#allocation7], 4294966208 }
  0x19   :  { %1292 = dma.done.wait [#allocation10], 1088  }
  0x1a   :  { %1293 = vsyncadd [#allocation10], 4294966208 }
  0x1b   :  { %1294 = dma.done.wait [#allocation13], 4096  }
  0x1c   :  { %1295 = vsyncadd [#allocation13], 4294963200  ;;  %vm122_vm0 = vcmask 261120   ;;  %v1308_v0 = vmov 0.0   ;;  %v866_v1 = vld [vmem:[#allocation9 + $0x28] sm:$0xf] }
  0x1d   :  { %123 = vst.msk [vmem:[#allocation2] sm:$0xff] %vm122_vm0, %v1308_v0  ;;  %v1055_v2 = vld [vmem:[#allocation9 + $0x34] sm:$0xf0]  ;;  %v1053_v3 = vld [vmem:[#allocation9 + $0x2c] sm:$0xf]  ;;  %v1089_v26 = vld [vmem:[#allocation3] sm:$0xff]  }
  0x1e   :  { %v867_v4 = vor.u32 %v1055_v2, %v866_v1  ;;  %v868_v5 = vld [vmem:[#allocation9 + $0x38] sm:$0xf0]  ;;  %v850_v6 = vld [vmem:[#allocation9 + $0x8] sm:$0xf]  ;;  %v1051_v7 = vld [vmem:[#allocation9 + $0x14] sm:$0xf0]  ;;  %v1090_v37 = vunpack.c.l.bf16 %v1089_v26  ;;  %v1091_v38 = vunpack.c.h.bf16 %v1089_v26 }
  0x1f   :  { %v871_v8 = vor.u32 %v1053_v3, %v868_v5  ;;  %v1049_v9 = vld [vmem:[#allocation9 + $0xc] sm:$0xf]  ;;  %v852_v10 = vld [vmem:[#allocation9 + $0x18] sm:$0xf0]  ;;  %v851_v12 = vor.u32 %v1051_v7, %v850_v6  ;;  %v858_v14 = vld [vmem:[#allocation9 + $0x20] sm:$0xf] }
  0x20   :  { %v279_v11 = vld [vmem:[#allocation6] sm:$0xf]  ;;  %374 = vmatpush.bf16.msra.mxu2 %v867_v4  ;;  %v1054_v15 = vld [vmem:[#allocation9 + $0x2c] sm:$0xf0]  ;;  %v1052_v16 = vld [vmem:[#allocation9 + $0x24] sm:$0xf]  ;;  %v855_v17 = vor.u32 %v1049_v9, %v852_v10 }
  0x21   :  { %v280_v13 = vunpack.c.l.bf16 %v279_v11  ;;  %387 = vmatpush.bf16.msra.mxu3 %v871_v8  ;;  %v859_v18 = vor.u32 %v1054_v15, %v858_v14  ;;  %v860_v19 = vld [vmem:[#allocation9 + $0x30] sm:$0xf0]  ;;  %v842_v20 = vld [vmem:[#allocation9] sm:$0xf]  ;;  %v1050_v21 = vld [vmem:[#allocation9 + $0xc] sm:$0xf0] }
  0x22   :  { %v863_v23 = vor.u32 %v1052_v16, %v860_v19  ;;  %v1048_v24 = vld [vmem:[#allocation9 + $0x4] sm:$0xf]  ;;  %v844_v25 = vld [vmem:[#allocation9 + $0x10] sm:$0xf0]  ;;  %v843_v27 = vor.u32 %v1050_v21, %v842_v20  ;;  %v902_v29 = vld [vmem:[#allocation8 + $0x28] sm:$0xf] }
  0x23   :  { %v281_v22 = vmax.f32 %v280_v13, 0.0  ;;  %348 = vmatpush.bf16.msra.mxu0 %v859_v18  ;;  %v847_v28 = vor.u32 %v1048_v24, %v844_v25  ;;  %v1047_v30 = vld [vmem:[#allocation8 + $0x34] sm:$0xf0]  ;;  %v1045_v31 = vld [vmem:[#allocation8 + $0x2c] sm:$0xf]  ;;  %v1104_v55 = vld [vmem:[#allocation3 + $0x8] sm:$0xff]  }
  0x24   :  { %375 = vmatpush.bf16.msra.mxu2 %v851_v12  ;;  %361 = vmatpush.bf16.msra.mxu1 %v863_v23  ;;  %v903_v33 = vor.u32 %v1047_v30, %v902_v29  ;;  %v904_v34 = vld [vmem:[#allocation8 + $0x38] sm:$0xf0]  ;;  %v886_v35 = vld [vmem:[#allocation8 + $0x8] sm:$0xf]  ;;  %v1043_v36 = vld [vmem:[#allocation8 + $0x14] sm:$0xf0]  ;;  %v1094_v60 = vunpack.c.l.bf16 %v1104_v55  ;;  %v1095_v61 = vunpack.c.h.bf16 %v1104_v55 }
  0x25   :  { %v282_v32 = vpack.c.bf16 %v281_v22, %v281_v22  ;;  %388 = vmatpush.bf16.msra.mxu3 %v855_v17  ;;  %v907_v39 = vor.u32 %v1045_v31, %v904_v34  ;;  %v1041_v40 = vld [vmem:[#allocation8 + $0xc] sm:$0xf]  ;;  %v888_v41 = vld [vmem:[#allocation8 + $0x18] sm:$0xf0]  ;;  %v894_v42 = vld [vmem:[#allocation8 + $0x20] sm:$0xf]  ;;  %v887_v43 = vor.u32 %v1043_v36, %v886_v35 }
  0x26   :  { %v1046_v44 = vld [vmem:[#allocation8 + $0x2c] sm:$0xf0]  ;;  %v1044_v45 = vld [vmem:[#allocation8 + $0x24] sm:$0xf]  ;;  %v896_v46 = vld [vmem:[#allocation8 + $0x30] sm:$0xf0]  ;;  %v891_v47 = vor.u32 %v1041_v40, %v888_v41 }
  0x27   :  { %874 = vmatmul.msk.bf16.vlgmr.msra.gmra.mxu2 %vm122_vm0, %v282_v32  ;;  %349 = vmatpush.bf16.msra.mxu0 %v843_v27  ;;  %v895_v48 = vor.u32 %v1046_v44, %v894_v42  ;;  %v878_v49 = vld [vmem:[#allocation8] sm:$0xf]  ;;  %v1042_v50 = vld [vmem:[#allocation8 + $0xc] sm:$0xf0]  ;;  %v1040_v51 = vld [vmem:[#allocation8 + $0x4] sm:$0xf]  ;;  %v899_v52 = vor.u32 %v1044_v45, %v896_v46 }
  0x28   :  { %469 = vmatpush.bf16.msrb.mxu2 %v903_v33  ;;  %875 = vmatmul.msk.bf16.vlgmr.msra.gmra.mxu3 %vm122_vm0, %v282_v32  ;;  %v879_v53 = vor.u32 %v1042_v50, %v878_v49  ;;  %v880_v54 = vld [vmem:[#allocation8 + $0x10] sm:$0xf0]  ;;  %v1105_v56 = vld [vmem:[#allocation3 + $0x10] sm:$0xff]   ;;  %v148_v57 = vrot.slane %v1090_v37, 4  ;;  %v149_v58 = vrot.slane %v1091_v38, 4  ;;  %v150_v4 = vrot.slane %v1094_v60, 4 }
  0x29   :  { %362 = vmatpush.bf16.msra.mxu1 %v847_v28  ;;  %482 = vmatpush.bf16.msrb.mxu3 %v907_v39  ;;  %v883_v59 = vor.u32 %v1040_v51, %v880_v54  ;;  %v1098_v62 = vunpack.c.l.bf16 %v1105_v56  ;;  %v1106_v63 = vld [vmem:[#allocation3 + $0x18] sm:$0xff]   ;;  %v1099_v0 = vunpack.c.h.bf16 %v1105_v56  ;;  %v151_v5 = vrot.slane %v1095_v61, 4  ;;  %s1309_s8 = smov [#allocation14]   ;;  %s827_s12 = sshll.u32 %s1400_s7, 4  ;;  %s828_s12 = int_to_ptr.hbm [resolvable:$true] %s827_s12 }
  0x2a   :  { %872 = vmatmul.msk.bf16.vlgmr.msra.gmra.mxu0 %vm122_vm0, %v282_v32  ;;  %v1102_v1 = vunpack.c.l.bf16 %v1106_v63  ;;  %v1103_v2 = vunpack.c.h.bf16 %v1106_v63  ;;  %v164_v3 = vadd.f32 %v1090_v37, %v148_v57  ;;  %v165_v7 = vadd.f32 %v1091_v38, %v149_v58  ;;  %s825_s9 = sshll.u32 %s1309_s8, 4  ;;  %s826_s9 = int_to_ptr.vmem [resolvable:$true] %s825_s9 }
  0x2b   :  { %443 = vmatpush.bf16.msrb.mxu0 %v895_v48  ;;  %v152_v6 = vrot.slane %v1098_v62, 4  ;;  %v153_v8 = vrot.slane %v1099_v0, 4  ;;  %v166_v12 = vadd.f32 %v1094_v60, %v150_v4  ;;  %v167_v13 = vadd.f32 %v1095_v61, %v151_v5  ;;  %v1071_v60 = vld [vmem:[#allocation12 + $0x78] sm:$0xff]  ;;  %v1062_v5 = vld [vmem:[#allocation12 + $0x30] sm:$0xff] }
  0x2c   :  { %470 = vmatpush.bf16.msrb.mxu2 %v887_v43  ;;  %873 = vmatmul.msk.bf16.vlgmr.msra.gmra.mxu1 %vm122_vm0, %v282_v32  ;;  %v154_v9 = vrot.slane %v1102_v1, 4  ;;  %v155_v10 = vrot.slane %v1103_v2, 4  ;;  %v172_v11 = vpack.c.bf16 %v164_v3, %v164_v3  ;;  %vm189_vm1 = vcmask 257024  }
  0x2d   :  { %456 = vmatpush.bf16.msrb.mxu1 %v899_v52  ;;  %483 = vmatpush.bf16.msrb.mxu3 %v891_v47  ;;  %v168_v14 = vadd.f32 %v1098_v62, %v152_v6  ;;  %v169_v15 = vadd.f32 %v1099_v0, %v153_v8  ;;  %v173_v18 = vpack.c.bf16 %v165_v7, %v165_v7  ;;  %vm254_vm2 = vcmask 1041409   ;;  %v1070_v6 = vld [vmem:[#allocation12 + $0x70] sm:$0xff] }
  0x2e   :  { %v170_v16 = vadd.f32 %v1102_v1, %v154_v9  ;;  %v171_v17 = vadd.f32 %v1103_v2, %v155_v10  ;;  %v174_v19 = vpack.c.bf16 %v166_v12, %v166_v12  ;;  %v175_v20 = vpack.c.bf16 %v167_v13, %v167_v13 }
  0x2f   :  { %444 = vmatpush.bf16.msrb.mxu0 %v879_v53  ;;  %v176_v21 = vpack.c.bf16 %v168_v14, %v168_v14  ;;  %v181_v22 = vunpack.c.l.bf16 %v172_v11  ;;  %v177_v23 = vpack.c.bf16 %v169_v15, %v169_v15  ;;  %v182_v26 = vunpack.c.l.bf16 %v173_v18 }
  0x30   :  { %v178_v24 = vpack.c.bf16 %v170_v16, %v170_v16  ;;  %v179_v25 = vpack.c.bf16 %v171_v17, %v171_v17  ;;  %v183_v27 = vunpack.c.l.bf16 %v174_v19  ;;  %v184_v28 = vunpack.c.l.bf16 %v175_v20 }
  0x31   :  { %457 = vmatpush.bf16.msrb.mxu1 %v883_v59  ;;  %v185_v29 = vunpack.c.l.bf16 %v176_v21  ;;  %v190_v30 = vsel %vm189_vm1, %v181_v22, 0.0  ;;  %v186_v31 = vunpack.c.l.bf16 %v177_v23  ;;  %v197_v35 = vsel %vm189_vm1, %v182_v26, 0.0  ;;  %v1063_v59 = vld [vmem:[#allocation12 + $0x38] sm:$0xff] }
  0x32   :  { %v187_v32 = vunpack.c.l.bf16 %v178_v24  ;;  %v188_v33 = vunpack.c.l.bf16 %v179_v25  ;;  %v191_v34 = vrot.slane %v190_v30, 4  ;;  %v204_v36 = vsel %vm189_vm1, %v183_v27, 0.0 }
  0x33   :  { %v211_v37 = vsel %vm189_vm1, %v184_v28, 0.0  ;;  %v218_v38 = vsel %vm189_vm1, %v185_v29, 0.0  ;;  %v198_v40 = vrot.slane %v197_v35, 4  ;;  %v205_v41 = vrot.slane %v204_v36, 4  ;;  %767 = vmatpush.bf16.msra.mxu0 %v1063_v59  ;;  %v1083_v59 = vld [vmem:[#allocation12 + $0xd8] sm:$0xff] }
  0x34   :  { %v192_v39 = vadd.f32 %v191_v34, %v190_v30  ;;  %v212_v42 = vrot.slane %v211_v37, 4  ;;  %v219_v43 = vrot.slane %v218_v38, 4  ;;  %v225_v44 = vsel %vm189_vm1, %v186_v31, 0.0 }
  0x35   :  { %v232_v45 = vsel %vm189_vm1, %v187_v32, 0.0  ;;  %v239_v46 = vsel %vm189_vm1, %v188_v33, 0.0  ;;  %v199_v48 = vadd.f32 %v198_v40, %v197_v35  ;;  %v206_v49 = vadd.f32 %v205_v41, %v204_v36  ;;  %780 = vmatpush.bf16.msra.mxu1 %v1071_v60  ;;  %v180_v33 = vld [vmem:[#allocation2] sm:$0xff] }
  0x36   :  { %v193_v47 = vrot.slane %v192_v39, 2  ;;  %v213_v50 = vadd.f32 %v212_v42, %v211_v37  ;;  %v220_v51 = vadd.f32 %v219_v43, %v218_v38  ;;  %v226_v52 = vrot.slane %v225_v44, 4  ;;  %v1079_v42 = vld [vmem:[#allocation12 + $0xb8] sm:$0xff] }
  0x37   :  { %v233_v53 = vrot.slane %v232_v45, 4  ;;  %v240_v54 = vrot.slane %v239_v46, 4  ;;  %v200_v56 = vrot.slane %v199_v48, 2  ;;  %v207_v57 = vrot.slane %v206_v49, 2  ;;  %768 = vmatpush.bf16.msra.mxu0 %v1062_v5  ;;  %v1087_v43 = vld [vmem:[#allocation12 + $0xf8] sm:$0xff]  ;;  %793 = vmatpush.bf16.msra.mxu2 %v1079_v42  ;;  %v1065_v5 = vld [vmem:[#allocation12 + $0x48] sm:$0xff] }
  0x38   :  { %v194_v55 = vadd.f32 %v193_v47, %v192_v39  ;;  %v214_v58 = vrot.slane %v213_v50, 2  ;;  %v221_v61 = vrot.slane %v220_v51, 2  ;;  %v227_v62 = vadd.f32 %v226_v52, %v225_v44  ;;  %v1061_v44 = vld [vmem:[#allocation12 + $0x28] sm:$0xff]  ;;  %806 = vmatpush.bf16.msra.mxu3 %v1087_v43  ;;  %v1086_v47 = vld [vmem:[#allocation12 + $0xf0] sm:$0xff]  ;;  %v1059_v52 = vld [vmem:[#allocation12 + $0x18] sm:$0xff] }
  0x39   :  { %v234_v63 = vadd.f32 %v233_v53, %v232_v45  ;;  %v241_v0 = vadd.f32 %v240_v54, %v239_v46  ;;  %v201_v2 = vadd.f32 %v200_v56, %v199_v48  ;;  %v208_v3 = vadd.f32 %v207_v57, %v206_v49  ;;  %781 = vmatpush.bf16.msra.mxu1 %v1070_v6  ;;  %v1069_v45 = vld [vmem:[#allocation12 + $0x68] sm:$0xff]  ;;  %v1078_v46 = vld [vmem:[#allocation12 + $0xb0] sm:$0xff]  ;;  %v1060_v48 = vld [vmem:[#allocation12 + $0x20] sm:$0xff] }
  0x3a   :  { %v195_v1 = vrot.slane %v194_v55, 1  ;;  %v215_v4 = vadd.f32 %v214_v58, %v213_v50  ;;  %v222_v7 = vadd.f32 %v221_v61, %v220_v51  ;;  %v228_v8 = vrot.slane %v227_v62, 2  ;;  %v1068_v49 = vld [vmem:[#allocation12 + $0x60] sm:$0xff]  ;;  %v1077_v50 = vld [vmem:[#allocation12 + $0xa8] sm:$0xff]  ;;  %v1067_v53 = vld [vmem:[#allocation12 + $0x58] sm:$0xff] }
  0x3b   :  { %v235_v9 = vrot.slane %v234_v63, 2  ;;  %v242_v10 = vrot.slane %v241_v0, 2  ;;  %v202_v12 = vrot.slane %v201_v2, 1  ;;  %v209_v13 = vrot.slane %v208_v3, 1  ;;  %769 = vmatpush.bf16.msra.mxu0 %v1061_v44  ;;  %794 = vmatpush.bf16.msra.mxu2 %v1078_v46  ;;  %v1085_v51 = vld [vmem:[#allocation12 + $0xe8] sm:$0xff]  ;;  %v1076_v54 = vld [vmem:[#allocation12 + $0xa0] sm:$0xff] }
  0x3c   :  { %v196_v11 = vadd.f32 %v195_v1, %v194_v55  ;;  %v216_v14 = vrot.slane %v215_v4, 1  ;;  %v223_v15 = vrot.slane %v222_v7, 1  ;;  %v229_v16 = vadd.f32 %v228_v8, %v227_v62  ;;  %807 = vmatpush.bf16.msra.mxu3 %v1086_v47  ;;  %v1084_v55 = vld [vmem:[#allocation12 + $0xe0] sm:$0xff]  ;;  %v1058_v56 = vld [vmem:[#allocation12 + $0x10] sm:$0xff]  ;;  %v1075_v58 = vld [vmem:[#allocation12 + $0x98] sm:$0xff] }
  0x3d   :  { %v236_v17 = vadd.f32 %v235_v9, %v234_v63  ;;  %v243_v18 = vadd.f32 %v242_v10, %v241_v0  ;;  %v203_v19 = vadd.f32 %v202_v12, %v201_v2  ;;  %v210_v20 = vadd.f32 %v209_v13, %v208_v3  ;;  %782 = vmatpush.bf16.msra.mxu1 %v1069_v45  ;;  %v1066_v57 = vld [vmem:[#allocation12 + $0x50] sm:$0xff]  ;;  %v1056_v8 = vld [vmem:[#allocation12] sm:$0xff]  ;;  %v1073_v10 = vld [vmem:[#allocation12 + $0x88] sm:$0xff] }
  0x3e   :  { %v217_v21 = vadd.f32 %v216_v14, %v215_v4  ;;  %vm256_vm3 = vcmask 1042434   ;;  %v224_v22 = vadd.f32 %v223_v15, %v222_v7  ;;  %v230_v23 = vrot.slane %v229_v16, 1  ;;  %v1057_v4 = vld [vmem:[#allocation12 + $0x8] sm:$0xff]  ;;  %v1074_v6 = vld [vmem:[#allocation12 + $0x90] sm:$0xff]  ;;  %v1064_v9 = vld [vmem:[#allocation12 + $0x40] sm:$0xff] }
  0x3f   :  { %v237_v24 = vrot.slane %v236_v17, 1  ;;  %v244_v25 = vrot.slane %v243_v18, 1  ;;  %v255_v26 = vsel %vm254_vm2, %v203_v19, %v196_v11  ;;  %vm258_vm4 = vcmask 1043459   ;;  %770 = vmatpush.bf16.msra.mxu0 %v1060_v48  ;;  %795 = vmatpush.bf16.msra.mxu2 %v1077_v50  ;;  %v1082_v7 = vld [vmem:[#allocation12 + $0xd0] sm:$0xff]  ;;  %v1081_v11 = vld [vmem:[#allocation12 + $0xc8] sm:$0xff]  ;;  %v1072_v12 = vld [vmem:[#allocation12 + $0x80] sm:$0xff] }
  0x40   :  { %vm260_vm5 = vcmask 1044484   ;;  %v231_v27 = vadd.f32 %v230_v23, %v229_v16  ;;  %v257_v29 = vsel %vm256_vm3, %v210_v20, %v255_v26  ;;  %vm262_vm6 = vcmask 1045509   ;;  %808 = vmatpush.bf16.msra.mxu3 %v1085_v51  ;;  %v1080_v13 = vld [vmem:[#allocation12 + $0xc0] sm:$0xff]  ;;  %v489_v14 = vld [vmem:[#allocation11] sm:$0xf] }
  0x41   :  { %v238_v28 = vadd.f32 %v237_v24, %v236_v17  ;;  %v245_v30 = vadd.f32 %v244_v25, %v243_v18  ;;  %v259_v31 = vsel %vm258_vm4, %v217_v21, %v257_v29  ;;  %vm264_vm7 = vcmask 1046534   ;;  %783 = vmatpush.bf16.msra.mxu1 %v1068_v49 }
  0x42   :  { %v261_v32 = vsel %vm260_vm5, %v224_v22, %v259_v31  ;;  %vm266_vm8 = vcmask 1047559   ;;  %v491_v15 = vperm.slane %v489_v14, 0  ;;  %v492_v16 = vperm.slane %v489_v14, 1 }
  0x43   :  { %v263_v34 = vsel %vm262_vm6, %v231_v27, %v261_v32  ;;  %771 = vmatpush.bf16.msra.mxu0 %v1059_v52  ;;  %796 = vmatpush.bf16.msra.mxu2 %v1076_v54  ;;  %v493_v25 = vperm.slane %v489_v14, 2  ;;  %v494_v26 = vperm.slane %v489_v14, 3 }
  0x44   :  { %v265_v35 = vsel %vm264_vm7, %v238_v28, %v263_v34  ;;  %809 = vmatpush.bf16.msra.mxu3 %v1084_v55 }
  0x45   :  { %v267_v36 = vsel %vm266_vm8, %v245_v30, %v265_v35  ;;  %784 = vmatpush.bf16.msra.mxu1 %v1067_v53 }
  0x46   :  { %v269_v37 = vadd.f32 %v267_v36, %v180_v33 }
  0x47   :  { %772 = vmatpush.bf16.msra.mxu0 %v1058_v56  ;;  %797 = vmatpush.bf16.msra.mxu2 %v1075_v58 }
  0x48   :  { %271 = vst.msk [vmem:[#allocation2] sm:$0xff] %vm122_vm0, %v269_v37  ;;  %810 = vmatpush.bf16.msra.mxu3 %v1083_v59 }
  0x49   :  { %785 = vmatpush.bf16.msra.mxu1 %v1066_v57 }
  0x4b   :  { %773 = vmatpush.bf16.msra.mxu0 %v1057_v4  ;;  %798 = vmatpush.bf16.msra.mxu2 %v1074_v6 }
  0x4c   :  { %811 = vmatpush.bf16.msra.mxu3 %v1082_v7 }
  0x4d   :  { %786 = vmatpush.bf16.msra.mxu1 %v1065_v5 }
  0x4f   :  { %v275_v38 = vld [vmem:[#allocation2] sm:$0xff]  ;;  %774 = vmatpush.bf16.msra.mxu0 %v1056_v8  ;;  %799 = vmatpush.bf16.msra.mxu2 %v1073_v10 }
  0x50   :  { %v276_v39 = vmul.f32 0.125, %v275_v38  ;;  %812 = vmatpush.bf16.msra.mxu3 %v1081_v11 }
  0x51   :  { %787 = vmatpush.bf16.msra.mxu1 %v1064_v9 }
  0x52   :  { %v277_v40 = vmax.f32 %v276_v39, 0.0 }
  0x53   :  { %800 = vmatpush.bf16.msra.mxu2 %v1072_v12 }
  0x54   :  { %v278_v41 = vpack.c.bf16 %v277_v40, %v277_v40  ;;  %813 = vmatpush.bf16.msra.mxu3 %v1080_v13 }
  0x56   :  { %908 = vmatmul.msk.bf16.vlgmr.msrb.gmra.mxu0 %vm122_vm0, %v278_v41  ;;  %909 = vmatmul.msk.bf16.vlgmr.msrb.gmra.mxu1 %vm122_vm0, %v278_v41 }
  0x57   :  { %910 = vmatmul.msk.bf16.vlgmr.msrb.gmra.mxu2 %vm122_vm0, %v278_v41  ;;  %911 = vmatmul.msk.bf16.vlgmr.msrb.gmra.mxu3 %vm122_vm0, %v278_v41  ;;  %v1119_v41 = vld [vmem:[%s1399_s6] ss:$0 sm:$0xff] }
  0xa7   :  { %v351_v60 = vpop.f32.mrf.mxu0 }
  0xa9   :  { %v364_v61 = vpop.f32.mrf.mxu1 }
  0xaa   :  { %v377_v62 = vpop.f32.mrf.mxu2 }
  0xab   :  { %v390_v63 = vpop.f32.mrf.mxu3 }
  0xaf   :  { %v353_v0 = vpop.f32.mrf.mxu0 }
  0xb1   :  { %v366_v1 = vpop.f32.mrf.mxu1 }
  0xb2   :  { %v379_v2 = vpop.f32.mrf.mxu2 }
  0xb3   :  { %v392_v3 = vpop.f32.mrf.mxu3 }
  0xd3   :  { %v446_v17 = vpop.f32.mrf.mxu0  ;;  %v459_v18 = vpop.f32.mrf.mxu1 }
  0xd4   :  { %v447_v19 = vadd.f32 %v446_v17, %v351_v60  ;;  %v460_v20 = vadd.f32 %v459_v18, %v364_v61 }
  0xd6   :  { %v499_v21 = vadd.f32 %v491_v15, %v447_v19  ;;  %v500_v22 = vadd.f32 %v492_v16, %v460_v20 }
  0xd8   :  { %v503_v23 = vpack.c.bf16 %v499_v21, %v499_v21  ;;  %v504_v24 = vpack.c.bf16 %v500_v22, %v500_v22 }
  0xda   :  { %v472_v27 = vpop.f32.mrf.mxu2  ;;  %v485_v28 = vpop.f32.mrf.mxu3  ;;  %775 = vmatmul.bf16.vlgmr.msra.gmra.mxu0 %v503_v23  ;;  %788 = vmatmul.bf16.vlgmr.msra.gmra.mxu1 %v504_v24 }
  0xdb   :  { %v473_v29 = vadd.f32 %v472_v27, %v377_v62  ;;  %v486_v30 = vadd.f32 %v485_v28, %v390_v63  ;;  %v448_v31 = vpop.f32.mrf.mxu0  ;;  %v461_v32 = vpop.f32.mrf.mxu1 }
  0xdd   :  { %v501_v33 = vadd.f32 %v493_v25, %v473_v29  ;;  %v502_v34 = vadd.f32 %v494_v26, %v486_v30 }
  0xdf   :  { %v505_v35 = vpack.c.bf16 %v501_v33, %v501_v33  ;;  %v506_v36 = vpack.c.bf16 %v502_v34, %v502_v34 }
  0xe1   :  { %801 = vmatmul.bf16.vlgmr.msra.gmra.mxu2 %v505_v35  ;;  %814 = vmatmul.bf16.vlgmr.msra.gmra.mxu3 %v506_v36 }
  0xe2   :  { %v474_v37 = vpop.f32.mrf.mxu2  ;;  %v487_v38 = vpop.f32.mrf.mxu3 }
 0x157   :  { %v776_v39 = vpop.f32.mrf.mxu0  ;;  %v789_v40 = vpop.f32.mrf.mxu1 }
 0x158   :  { %v777_v42 = vadd.f32 %v1119_v41, %v776_v39 }
 0x15a   :  { %v790_v45 = vadd.f32 %v789_v40, %v777_v42 }
 0x15f   :  { %v778_v43 = vpop.f32.mrf.mxu0  ;;  %v791_v44 = vpop.f32.mrf.mxu1 }
 0x164   :  { %v802_v46 = vpop.f32.mrf.mxu2  ;;  %v815_v47 = vpop.f32.mrf.mxu3 }
 0x165   :  { %v803_v48 = vadd.f32 %v802_v46, %v790_v45 }
 0x167   :  { %v816_v49 = vadd.f32 %v815_v47, %v803_v48 }
 0x169   :  { %819 = vst [vmem:[#allocation14] sm:$0xff] %v816_v49 }
 0x16a   :  { %830 = dma.vmem_to_hbm [thread:$0]  %s826_s9, 128, %s828_s12, [#allocation5]  }
 0x16c   :  { %v804_v50 = vpop.f32.mrf.mxu2  ;;  %v817_v51 = vpop.f32.mrf.mxu3 }
 0x16d   :  { %1296 = dma.done.wait [#allocation5], 128  }
 0x16e   :  { %1297 = vsyncadd [#allocation5], 4294967168 }
 0x16f   :  { %835 = vsyncpa [#allocation4], 1 }
 0x170   :  { %836 = vsyncpa [#allocation7], 1 }
 0x171   :  { %837 = vsyncpa [#allocation10], 1 }
 0x172   :  { %838 = vsyncpa [#allocation13], 1 }
 0x173   :  { %839 = vsyncpa [#allocation5], 1 }

</bundles_post_ra>
